<compile_context>
chip_gen: v6e
topology: v6e:2x2x1
jax: 0.10.0
libtpu: 0.0.40
codegen_flags: <defaults>
</compile_context>

<pallas_src>
import functools
import math

import jax
import jax.numpy as jnp
import numpy as np
from jax import lax
from jax.experimental import pallas as pl
from jax.experimental.pallas import tpu as pltpu

_EPS = 1e-5


# ----------------------------------------------------------------------------
# In-kernel helpers
# ----------------------------------------------------------------------------
def _partial_stats(h):
    """Per-channel (sum, sum-of-squares) of an (M, C) f32 tile -> (2, C)."""
    return jnp.concatenate([jnp.sum(h, axis=0, keepdims=True),
                            jnp.sum(h * h, axis=0, keepdims=True)], axis=0)


def _scale_shift_from_sums(sums, gamma, beta, inv_m):
    """Fold train-mode BN (sum / sumsq over the batch) into scale/shift."""
    mean = sums[0:1, :] * inv_m                          # (1, C)
    var = sums[1:2, :] * inv_m - mean * mean             # biased variance
    scale = gamma * lax.rsqrt(var + _EPS)
    shift = beta - mean * scale
    return scale, shift


def _conv3x3_packed(a_bf16, w2_ref, n, hh, ww, c1, c2):
    """3x3 same-padded conv as three K=3*C1 MXU matmuls (kw packed along K).

    a_bf16: (n, hh, ww, c1) bf16 activations.  w2_ref: (3, 3*c1, c2) with the
    contraction axis ordered (kw, c_in).  Returns f32 (n*hh*ww, c2).
    """
    zcol = jnp.zeros((n, hh, 1, c1), jnp.bfloat16)
    zrow = jnp.zeros((n, 1, ww + 2, c1), jnp.bfloat16)
    ap = jnp.concatenate(
        [zrow, jnp.concatenate([zcol, a_bf16, zcol], axis=2), zrow], axis=1)
    acc = jnp.zeros((n * hh * ww, c2), jnp.float32)
    for kh in range(3):
        rows = ap[:, kh:kh + hh]                              # (n, hh, ww+2, c1)
        packed = jnp.concatenate(
            [rows[:, :, 0:ww], rows[:, :, 1:ww + 1], rows[:, :, 2:ww + 2]],
            axis=-1)                                          # (n, hh, ww, 3*c1)
        acc += jnp.dot(packed.reshape(n * hh * ww, 3 * c1), w2_ref[kh],
                       preferred_element_type=jnp.float32)
    return acc


def _se_gate(pooled, sew1_ref, seb1_ref, sew2_ref, seb2_ref):
    """SEModule gate: FC1 -> relu -> FC2 -> sigmoid.  pooled: (B, Cout) f32."""
    s = jnp.dot(pooled, sew1_ref[...], preferred_element_type=jnp.float32)
    s = jnp.maximum(s + seb1_ref[...], 0.0)
    s = jnp.dot(s, sew2_ref[...], preferred_element_type=jnp.float32)
    s = s + seb2_ref[...]
    return 1.0 / (1.0 + jnp.exp(-s))


# ----------------------------------------------------------------------------
# Split path kernels (grid over batch, all "parallel")
# ----------------------------------------------------------------------------
def _conv1_kernel(x_ref, w1_ref, h1_ref, s1_ref):
    _, hh, ww, cin = x_ref.shape
    c1 = h1_ref.shape[-1]
    x = x_ref[0].reshape(hh * ww, cin)                        # bf16
    h = jnp.dot(x, w1_ref[...], preferred_element_type=jnp.float32)
    h1_ref[...] = h.astype(jnp.bfloat16).reshape(1, hh, ww, c1)
    s1_ref[...] = _partial_stats(h).reshape(1, 2, c1)


def _conv2_kernel(h1_ref, s1_ref, g1_ref, b1_ref, w2_ref,
                  h2_ref, s2_ref, *, inv_m):
    _, hh, ww, c1 = h1_ref.shape
    c2 = h2_ref.shape[-1]
    scale, shift = _scale_shift_from_sums(s1_ref[...], g1_ref[...],
                                          b1_ref[...], inv_m)
    a = jnp.maximum(
        h1_ref[0].astype(jnp.float32).reshape(hh * ww, c1) * scale + shift, 0.0)
    a = a.astype(jnp.bfloat16).reshape(1, hh, ww, c1)
    acc = _conv3x3_packed(a, w2_ref, 1, hh, ww, c1, c2)
    h2_ref[...] = acc.astype(jnp.bfloat16).reshape(1, hh, ww, c2)
    s2_ref[...] = _partial_stats(acc).reshape(1, 2, c2)


def _conv3_kernel(h2_ref, s2_ref, g2_ref, b2_ref, w3_ref,
                  h3_ref, s3_ref, *, inv_m):
    _, hh, ww, c2 = h2_ref.shape
    cout = h3_ref.shape[-1]
    scale, shift = _scale_shift_from_sums(s2_ref[...], g2_ref[...],
                                          b2_ref[...], inv_m)
    a = jnp.maximum(
        h2_ref[0].astype(jnp.float32).reshape(hh * ww, c2) * scale + shift, 0.0)
    h = jnp.dot(a.astype(jnp.bfloat16), w3_ref[...],
                preferred_element_type=jnp.float32)
    h3_ref[...] = h.astype(jnp.bfloat16).reshape(1, hh, ww, cout)
    s3_ref[...] = _partial_stats(h).reshape(1, 2, cout)


def _finalize_kernel(h3_ref, s3_ref, g3_ref, b3_ref, x_ref,
                     sew1_ref, seb1_ref, sew2_ref, seb2_ref,
                     o_ref, *, inv_m, inv_hw, use_se):
    _, hh, ww, cout = h3_ref.shape
    scale, shift = _scale_shift_from_sums(s3_ref[...], g3_ref[...],
                                          b3_ref[...], inv_m)
    h = h3_ref[0].astype(jnp.float32).reshape(hh * ww, cout) * scale + shift
    if use_se:
        pooled = jnp.sum(h, axis=0, keepdims=True) * inv_hw   # (1, Cout)
        h = h * _se_gate(pooled, sew1_ref, seb1_ref, sew2_ref, seb2_ref)
    res = x_ref[0].astype(jnp.float32).reshape(hh * ww, cout)
    o_ref[...] = jnp.maximum(h + res, 0.0).reshape(1, hh, ww, cout)


# ----------------------------------------------------------------------------
# Fused path kernel (whole batch resident in VMEM)
# ----------------------------------------------------------------------------
def _fused_kernel(x_ref, w1_ref, g1_ref, b1_ref, w2_ref, g2_ref, b2_ref,
                  w3_ref, g3_ref, b3_ref,
                  sew1_ref, seb1_ref, sew2_ref, seb2_ref,
                  o_ref, *, use_se):
    n, hh, ww, cin = x_ref.shape
    c1 = w1_ref.shape[-1]
    c2 = w2_ref.shape[-1]
    cout = w3_ref.shape[-1]
    m = n * hh * ww
    inv_m = 1.0 / float(m)
    inv_hw = 1.0 / float(hh * ww)

    x = x_ref[...].reshape(m, cin)                            # bf16

    # conv1 (1x1) -> bn1 (batch stats) -> relu
    h1 = jnp.dot(x, w1_ref[...], preferred_element_type=jnp.float32)
    sc, sh = _scale_shift_from_sums(_partial_stats(h1), g1_ref[...],
                                    b1_ref[...], inv_m)
    a1 = jnp.maximum(h1 * sc + sh, 0.0).astype(jnp.bfloat16)
    a1 = a1.reshape(n, hh, ww, c1)

    # conv2 (3x3, pad=1) -> bn2 -> relu
    h2 = _conv3x3_packed(a1, w2_ref, n, hh, ww, c1, c2)
    sc, sh = _scale_shift_from_sums(_partial_stats(h2), g2_ref[...],
                                    b2_ref[...], inv_m)
    a2 = jnp.maximum(h2 * sc + sh, 0.0).astype(jnp.bfloat16)

    # conv3 (1x1) -> bn3
    h3 = jnp.dot(a2, w3_ref[...], preferred_element_type=jnp.float32)
    sc, sh = _scale_shift_from_sums(_partial_stats(h3), g3_ref[...],
                                    b3_ref[...], inv_m)
    h = h3 * sc + sh

    if use_se:
        pooled = jnp.sum(h.reshape(n, hh * ww, cout), axis=1) * inv_hw  # (n, Cout)
        gate = _se_gate(pooled, sew1_ref, seb1_ref, sew2_ref, seb2_ref)
        h = (h.reshape(n, hh * ww, cout) * gate[:, None, :]).reshape(m, cout)

    out = jnp.maximum(h + x.astype(jnp.float32), 0.0)
    o_ref[...] = out.reshape(n, hh, ww, cout)


# ----------------------------------------------------------------------------
# Wrapper
# ----------------------------------------------------------------------------
def _vmem_cap_bytes():
    try:
        phys = int(pltpu.get_tpu_info().vmem_capacity_bytes)
    except Exception:
        phys = 64 << 20                      # conservative (v7x per-TC)
    return max((phys * 5) // 8, 16 << 20)    # ~40 MiB on v7x, ~80 MiB on v5e/v6e


@functools.partial(jax.jit, static_argnames=("use_se", "fuse"))
def bottleneck_gl_forward(x_nchw, p, *, use_se, fuse=None):
    n, cin, hh, ww = x_nchw.shape
    c1 = p['w1'].shape[1]
    c2 = p['w3'].shape[0]
    cout = p['w3'].shape[1]
    red = p['se_w1'].shape[1]
    assert cin == cout, "identity residual requires inplanes == planes*4"

    m_total = n * hh * ww
    inv_m = 1.0 / float(m_total)
    inv_hw = 1.0 / float(hh * ww)
    f32 = jnp.float32
    bf16 = jnp.bfloat16

    # NHWC activations stored bf16 (conv operands + residual); BN params f32.
    x = jnp.transpose(x_nchw, (0, 2, 3, 1)).astype(bf16)

    w1 = p['w1'].astype(bf16)                                    # (Cin, C1)
    w2p = p['w2_hwio'].astype(bf16).reshape(3, 3 * c1, c2)       # (kh, kw*Cin, C2)
    w3 = p['w3'].astype(bf16)                                    # (C2, Cout)

    cap = _vmem_cap_bytes()
    wbytes = ((cin * c1 + 9 * c1 * c2 + c2 * cout) * 2
              + (cout * red + red + red * cout + cout) * 4
              + (c1 + c2 + cout) * 3 * 4)

    # Estimated VMEM footprint of the fused single-call path.
    inter = (m_total * 4 * (c1 + c2 + 2 * cout)
             + n * (hh + 2) * (ww + 2) * c1 * 2 * 4
             + m_total * 3 * c1 * 2)
    fused_need = 2 * m_total * (cin * 2 + cout * 4) + wbytes + inter + (8 << 20)
    if fuse is None:
        fuse = fused_need <= cap

    def img_spec(c):
        return pl.BlockSpec((1, hh, ww, c), lambda i: (i, 0, 0, 0))

    def pstats_spec(c):
        return pl.BlockSpec((1, 2, c), lambda i: (i, 0, 0))

    def full_spec(shape):
        zeros = (0,) * len(shape)
        return pl.BlockSpec(tuple(shape), lambda i, z=zeros: z)

    def vlim(need):
        return int(min(max(int(need) + (4 << 20), 16 << 20), cap))

    if fuse:
        out = pl.pallas_call(
            functools.partial(_fused_kernel, use_se=use_se),
            grid=(1,),
            in_specs=[full_spec(x.shape), full_spec(w1.shape),
                      full_spec(p['g1'].shape), full_spec(p['b1'].shape),
                      full_spec(w2p.shape),
                      full_spec(p['g2'].shape), full_spec(p['b2'].shape),
                      full_spec(w3.shape),
                      full_spec(p['g3'].shape), full_spec(p['b3'].shape),
                      full_spec(p['se_w1'].shape), full_spec(p['se_b1'].shape),
                      full_spec(p['se_w2'].shape), full_spec(p['se_b2'].shape)],
            out_specs=full_spec((n, hh, ww, cout)),
            out_shape=jax.ShapeDtypeStruct((n, hh, ww, cout), f32),
            compiler_params=pltpu.CompilerParams(
                dimension_semantics=("arbitrary",),
                vmem_limit_bytes=vlim(fused_need)),
        )(x, w1, p['g1'], p['b1'], w2p, p['g2'], p['b2'],
          w3, p['g3'], p['b3'],
          p['se_w1'], p['se_b1'], p['se_w2'], p['se_b2'])
        return jnp.transpose(out, (0, 3, 1, 2))

    img2 = hh * ww * 2   # bf16 bytes per (pixel, channel)
    img4 = hh * ww * 4   # f32 bytes per (pixel, channel)

    # --- K1: conv1 + per-image bn1 partial stats ----------------------------
    h1, s1p = pl.pallas_call(
        _conv1_kernel,
        grid=(n,),
        in_specs=[img_spec(cin), full_spec((cin, c1))],
        out_specs=(img_spec(c1), pstats_spec(c1)),
        out_shape=(jax.ShapeDtypeStruct((n, hh, ww, c1), bf16),
                   jax.ShapeDtypeStruct((n, 2, c1), f32)),
        compiler_params=pltpu.CompilerParams(
            dimension_semantics=("parallel",),
            vmem_limit_bytes=vlim(2 * (img2 * (cin + c1) + 2 * c1 * 4)
                                  + cin * c1 * 2 + img4 * c1)),
    )(x, w1)
    s1 = jnp.sum(s1p, axis=0)                     # (2, C1) global batch stats

    # --- K2: bn1+relu + 3x3 conv (kw-packed K) + per-image bn2 stats --------
    h2, s2p = pl.pallas_call(
        functools.partial(_conv2_kernel, inv_m=inv_m),
        grid=(n,),
        in_specs=[img_spec(c1), full_spec((2, c1)),
                  full_spec((1, c1)), full_spec((1, c1)),
                  full_spec((3, 3 * c1, c2))],
        out_specs=(img_spec(c2), pstats_spec(c2)),
        out_shape=(jax.ShapeDtypeStruct((n, hh, ww, c2), bf16),
                   jax.ShapeDtypeStruct((n, 2, c2), f32)),
        compiler_params=pltpu.CompilerParams(
            dimension_semantics=("parallel",),
            vmem_limit_bytes=vlim(
                2 * (img2 * (c1 + c2) + 2 * c2 * 4)
                + 9 * c1 * c2 * 2
                + (hh + 2) * (ww + 2) * c1 * 2 * 4
                + img4 * (3 * c1 + c2))),
    )(h1, s1, p['g1'], p['b1'], w2p)
    s2 = jnp.sum(s2p, axis=0)

    # --- K3: bn2+relu + conv3 + per-image bn3 stats --------------------------
    h3, s3p = pl.pallas_call(
        functools.partial(_conv3_kernel, inv_m=inv_m),
        grid=(n,),
        in_specs=[img_spec(c2), full_spec((2, c2)),
                  full_spec((1, c2)), full_spec((1, c2)),
                  full_spec((c2, cout))],
        out_specs=(img_spec(cout), pstats_spec(cout)),
        out_shape=(jax.ShapeDtypeStruct((n, hh, ww, cout), bf16),
                   jax.ShapeDtypeStruct((n, 2, cout), f32)),
        compiler_params=pltpu.CompilerParams(
            dimension_semantics=("parallel",),
            vmem_limit_bytes=vlim(2 * (img2 * (c2 + cout) + 2 * cout * 4)
                                  + c2 * cout * 2 + img4 * (c2 + cout))),
    )(h2, s2, p['g2'], p['b2'], w3)
    s3 = jnp.sum(s3p, axis=0)

    # --- K4: bn3 + SE + residual + relu --------------------------------------
    out = pl.pallas_call(
        functools.partial(_finalize_kernel, inv_m=inv_m, inv_hw=inv_hw,
                          use_se=use_se),
        grid=(n,),
        in_specs=[img_spec(cout), full_spec((2, cout)),
                  full_spec((1, cout)), full_spec((1, cout)),
                  img_spec(cin),
                  full_spec((cout, red)), full_spec((1, red)),
                  full_spec((red, cout)), full_spec((1, cout))],
        out_specs=img_spec(cout),
        out_shape=jax.ShapeDtypeStruct((n, hh, ww, cout), f32),
        compiler_params=pltpu.CompilerParams(
            dimension_semantics=("parallel",),
            vmem_limit_bytes=vlim(2 * (img2 * (cout + cin) + img4 * cout)
                                  + (cout * red * 2 + red + cout) * 4
                                  + img4 * cout)),
    )(h3, s3, p['g3'], p['b3'], x,
      p['se_w1'], p['se_b1'], p['se_w2'], p['se_b2'])

    return jnp.transpose(out, (0, 3, 1, 2))       # back to NCHW


# ----------------------------------------------------------------------------
# Parameters and pure-JAX reference
# ----------------------------------------------------------------------------
def init_params(key, inplanes, planes, cardinality=1, base_width=64, reduce_first=1):
    width = int(math.floor(planes * (base_width / 64)) * cardinality)
    first_planes = width // reduce_first
    outplanes = planes * 4
    red = max(planes // 4, 1)
    ks = jax.random.split(key, 12)

    def nrm(k, shape, scale=0.2):
        return jax.random.normal(k, shape, jnp.float32) * scale

    p = {}
    # conv1: torch (first_planes, inplanes, 1, 1) -> matmul (inplanes, first_planes)
    p['w1'] = nrm(ks[0], (inplanes, first_planes))
    p['g1'] = 1.0 + 0.1 * jax.random.normal(ks[1], (1, first_planes), jnp.float32)
    p['b1'] = 0.1 * jax.random.normal(ks[2], (1, first_planes), jnp.float32)
    # conv2: torch (width, first_planes, 3, 3) -> HWIO
    w2_oihw = nrm(ks[3], (width, first_planes, 3, 3))
    p['w2_hwio'] = jnp.transpose(w2_oihw, (2, 3, 1, 0))          # (3,3,C1,C2)
    p['g2'] = 1.0 + 0.1 * jax.random.normal(ks[4], (1, width), jnp.float32)
    p['b2'] = 0.1 * jax.random.normal(ks[5], (1, width), jnp.float32)
    # conv3: torch (outplanes, width, 1, 1) -> (width, outplanes)
    p['w3'] = nrm(ks[6], (width, outplanes))
    p['g3'] = 1.0 + 0.1 * jax.random.normal(ks[7], (1, outplanes), jnp.float32)
    p['b3'] = 0.1 * jax.random.normal(ks[8], (1, outplanes), jnp.float32)
    # SEModule: fc1 (red, outplanes, 1, 1)+bias, fc2 (outplanes, red, 1, 1)+bias
    p['se_w1'] = nrm(ks[9], (outplanes, red))
    p['se_b1'] = 0.1 * jax.random.normal(ks[10], (1, red), jnp.float32)
    p['se_w2'] = nrm(ks[11], (red, outplanes))
    p['se_b2'] = jnp.full((1, outplanes), 0.05, jnp.float32)
    return p


def ref_forward(x_nchw, p, use_se):
    """Pure-JAX f32 reference of BottleneckGl.forward (train-mode BN, defaults)."""
    x = jnp.transpose(x_nchw, (0, 2, 3, 1)).astype(jnp.float32)

    def bn(h, g, b):
        m_ = h.mean(axis=(0, 1, 2))
        v_ = ((h - m_) ** 2).mean(axis=(0, 1, 2))
        return (h - m_) / jnp.sqrt(v_ + _EPS) * g.reshape(-1) + b.reshape(-1)

    h = jnp.einsum('nhwc,cd->nhwd', x, p['w1'])
    h = jax.nn.relu(bn(h, p['g1'], p['b1']))
    h = lax.conv_general_dilated(h, p['w2_hwio'], window_strides=(1, 1),
                                 padding=((1, 1), (1, 1)),
                                 dimension_numbers=('NHWC', 'HWIO', 'NHWC'))
    h = jax.nn.relu(bn(h, p['g2'], p['b2']))
    h = jnp.einsum('nhwc,cd->nhwd', h, p['w3'])
    h = bn(h, p['g3'], p['b3'])
    if use_se:
        pooled = h.mean(axis=(1, 2))
        s = jax.nn.relu(pooled @ p['se_w1'] + p['se_b1'].reshape(-1))
        s = jax.nn.sigmoid(s @ p['se_w2'] + p['se_b2'].reshape(-1))
        h = h * s[:, None, None, :]
    out = jax.nn.relu(h + x)
    return jnp.transpose(out, (0, 3, 1, 2))


if __name__ == "__main__":
    key = jax.random.PRNGKey(0)
    kx, kp = jax.random.split(key)

    N, H, W = 2, 8, 8
    planes = 8
    inplanes = planes * 4          # == outplanes, so the identity residual applies

    x = jax.random.normal(kx, (N, inplanes, H, W), jnp.float32)   # PyTorch NCHW
    params = init_params(kp, inplanes, planes)

    for use_se in (False, True):
        ref = jax.block_until_ready(ref_forward(x, params, use_se))
        for fuse in (True, False):          # exercise both the fused and split paths
            out = jax.block_until_ready(
                bottleneck_gl_forward(x, params, use_se=use_se, fuse=fuse))
            # bf16 MXU operands / bf16 intermediates (f32 accumulation) vs an
            # all-f32 reference.
            np.testing.assert_allclose(np.asarray(out), np.asarray(ref),
                                       rtol=5e-2, atol=5e-2)
            assert out.shape == (N, inplanes, H, W)

    print("KERNEL_OK")
</pallas_src>

<mosaic_0001>
module attributes {stable_mosaic.version = 11 : i64} {
  func.func @_fused_kernel(%arg0: i32, %arg1: memref<2x8x8x32xbf16, #tpu.memory_space<vmem>>, %arg2: memref<32x8xbf16, #tpu.memory_space<vmem>>, %arg3: memref<1x8xf32, #tpu.memory_space<vmem>>, %arg4: memref<1x8xf32, #tpu.memory_space<vmem>>, %arg5: memref<3x24x8xbf16, #tpu.memory_space<vmem>>, %arg6: memref<1x8xf32, #tpu.memory_space<vmem>>, %arg7: memref<1x8xf32, #tpu.memory_space<vmem>>, %arg8: memref<8x32xbf16, #tpu.memory_space<vmem>>, %arg9: memref<1x32xf32, #tpu.memory_space<vmem>>, %arg10: memref<1x32xf32, #tpu.memory_space<vmem>>, %arg11: memref<32x2xf32, #tpu.memory_space<vmem>>, %arg12: memref<1x2xf32, #tpu.memory_space<vmem>>, %arg13: memref<2x32xf32, #tpu.memory_space<vmem>>, %arg14: memref<1x32xf32, #tpu.memory_space<vmem>>, %arg15: memref<2x8x8x32xf32, #tpu.memory_space<vmem>>) attributes {dimension_semantics = [#tpu.dimension_semantics<arbitrary>], iteration_bounds = array<i64: 1>, scalar_prefetch = 0 : i64, scratch_operands = 0 : i64, tpu.core_type = #tpu.core_type<tc>, window_params = [{pipeline_mode = #tpu.pipeline_mode<synchronous>, transform_indices = @transform_0, window_bounds = array<i64: 2, 8, 8, 32>}, {pipeline_mode = #tpu.pipeline_mode<synchronous>, transform_indices = @transform_1, window_bounds = array<i64: 32, 8>}, {pipeline_mode = #tpu.pipeline_mode<synchronous>, transform_indices = @transform_2, window_bounds = array<i64: 1, 8>}, {pipeline_mode = #tpu.pipeline_mode<synchronous>, transform_indices = @transform_3, window_bounds = array<i64: 1, 8>}, {pipeline_mode = #tpu.pipeline_mode<synchronous>, transform_indices = @transform_4, window_bounds = array<i64: 3, 24, 8>}, {pipeline_mode = #tpu.pipeline_mode<synchronous>, transform_indices = @transform_5, window_bounds = array<i64: 1, 8>}, {pipeline_mode = #tpu.pipeline_mode<synchronous>, transform_indices = @transform_6, window_bounds = array<i64: 1, 8>}, {pipeline_mode = #tpu.pipeline_mode<synchronous>, transform_indices = @transform_7, window_bounds = array<i64: 8, 32>}, {pipeline_mode = #tpu.pipeline_mode<synchronous>, transform_indices = @transform_8, window_bounds = array<i64: 1, 32>}, {pipeline_mode = #tpu.pipeline_mode<synchronous>, transform_indices = @transform_9, window_bounds = array<i64: 1, 32>}, {pipeline_mode = #tpu.pipeline_mode<synchronous>, transform_indices = @transform_10, window_bounds = array<i64: 32, 2>}, {pipeline_mode = #tpu.pipeline_mode<synchronous>, transform_indices = @transform_11, window_bounds = array<i64: 1, 2>}, {pipeline_mode = #tpu.pipeline_mode<synchronous>, transform_indices = @transform_12, window_bounds = array<i64: 2, 32>}, {pipeline_mode = #tpu.pipeline_mode<synchronous>, transform_indices = @transform_13, window_bounds = array<i64: 1, 32>}, {pipeline_mode = #tpu.pipeline_mode<synchronous>, transform_indices = @transform_14, window_bounds = array<i64: 2, 8, 8, 32>}]} {
    %c0 = arith.constant 0 : index
    %c0_0 = arith.constant 0 : index
    %c0_1 = arith.constant 0 : index
    %c0_2 = arith.constant 0 : index
    %0 = vector.load %arg1[%c0, %c0_0, %c0_1, %c0_2] : memref<2x8x8x32xbf16, #tpu.memory_space<vmem>>, vector<2x8x8x32xbf16>
    %1 = vector.shape_cast %0 : vector<2x8x8x32xbf16> to vector<128x32xbf16>
    %c0_3 = arith.constant 0 : index
    %c0_4 = arith.constant 0 : index
    %2 = vector.load %arg2[%c0_3, %c0_4] : memref<32x8xbf16, #tpu.memory_space<vmem>>, vector<32x8xbf16>
    %cst = arith.constant dense<0.000000e+00> : vector<128x8xf32>
    %3 = tpu.matmul %1, %2, %cst {dimension_numbers = #tpu.dot_dimension_numbers<[1], [0], [0], [1], [0, 0, 1, 1], [], []>} : vector<128x32xbf16>, vector<32x8xbf16>, vector<128x8xf32> -> vector<128x8xf32>
    %cst_5 = arith.constant dense<0.000000e+00> : vector<8xf32>
    %4 = vector.multi_reduction <add>, %3, %cst_5 [0] : vector<128x8xf32> to vector<8xf32>
    %5 = vector.shape_cast %4 : vector<8xf32> to vector<1x8xf32>
    %6 = arith.mulf %3, %3 : vector<128x8xf32>
    %cst_6 = arith.constant dense<0.000000e+00> : vector<8xf32>
    %7 = vector.multi_reduction <add>, %6, %cst_6 [0] : vector<128x8xf32> to vector<8xf32>
    %8 = vector.shape_cast %7 : vector<8xf32> to vector<1x8xf32>
    %9 = tpu.concatenate %5, %8 in 0 : vector<1x8xf32>, vector<1x8xf32> -> vector<2x8xf32>
    %c0_7 = arith.constant 0 : index
    %c0_8 = arith.constant 0 : index
    %10 = vector.load %arg3[%c0_7, %c0_8] : memref<1x8xf32, #tpu.memory_space<vmem>>, vector<1x8xf32>
    %c0_9 = arith.constant 0 : index
    %c0_10 = arith.constant 0 : index
    %11 = vector.load %arg4[%c0_9, %c0_10] : memref<1x8xf32, #tpu.memory_space<vmem>>, vector<1x8xf32>
    %12 = vector.extract_strided_slice %9 {offsets = [0, 0], sizes = [1, 8], strides = [1, 1]} : vector<2x8xf32> to vector<1x8xf32>
    %cst_11 = arith.constant 7.812500e-03 : f32
    %13 = vector.broadcast %cst_11 : f32 to vector<1x8xf32>
    %14 = arith.mulf %12, %13 : vector<1x8xf32>
    %15 = vector.extract_strided_slice %9 {offsets = [1, 0], sizes = [1, 8], strides = [1, 1]} : vector<2x8xf32> to vector<1x8xf32>
    %cst_12 = arith.constant 7.812500e-03 : f32
    %16 = vector.broadcast %cst_12 : f32 to vector<1x8xf32>
    %17 = arith.mulf %15, %16 : vector<1x8xf32>
    %18 = arith.mulf %14, %14 : vector<1x8xf32>
    %19 = arith.subf %17, %18 : vector<1x8xf32>
    %cst_13 = arith.constant 9.99999974E-6 : f32
    %20 = vector.broadcast %cst_13 : f32 to vector<1x8xf32>
    %21 = arith.addf %19, %20 : vector<1x8xf32>
    %22 = math.rsqrt %21 : vector<1x8xf32>
    %23 = arith.mulf %10, %22 : vector<1x8xf32>
    %24 = arith.mulf %14, %23 : vector<1x8xf32>
    %25 = arith.subf %11, %24 : vector<1x8xf32>
    %26 = vector.broadcast %23 : vector<1x8xf32> to vector<128x8xf32>
    %27 = arith.mulf %3, %26 : vector<128x8xf32>
    %28 = vector.broadcast %25 : vector<1x8xf32> to vector<128x8xf32>
    %29 = arith.addf %27, %28 : vector<128x8xf32>
    %cst_14 = arith.constant 0.000000e+00 : f32
    %30 = vector.broadcast %cst_14 : f32 to vector<128x8xf32>
    %31 = arith.maximumf %29, %30 : vector<128x8xf32>
    %32 = arith.truncf %31 : vector<128x8xf32> to vector<128x8xbf16>
    %33 = vector.shape_cast %32 : vector<128x8xbf16> to vector<2x8x8x8xbf16>
    %cst_15 = arith.constant 0.000000e+00 : bf16
    %34 = vector.broadcast %cst_15 : bf16 to vector<2x8x1x8xbf16>
    %cst_16 = arith.constant 0.000000e+00 : bf16
    %35 = vector.broadcast %cst_16 : bf16 to vector<2x1x10x8xbf16>
    %36 = tpu.concatenate %34, %33, %34 in 2 : vector<2x8x1x8xbf16>, vector<2x8x8x8xbf16>, vector<2x8x1x8xbf16> -> vector<2x8x10x8xbf16>
    %37 = tpu.concatenate %35, %36, %35 in 1 : vector<2x1x10x8xbf16>, vector<2x8x10x8xbf16>, vector<2x1x10x8xbf16> -> vector<2x10x10x8xbf16>
    %cst_17 = arith.constant 0.000000e+00 : f32
    %38 = vector.broadcast %cst_17 : f32 to vector<128x8xf32>
    %39 = vector.extract_strided_slice %37 {offsets = [0, 0, 0, 0], sizes = [2, 8, 10, 8], strides = [1, 1, 1, 1]} : vector<2x10x10x8xbf16> to vector<2x8x10x8xbf16>
    %40 = vector.extract_strided_slice %39 {offsets = [0, 0, 0, 0], sizes = [2, 8, 8, 8], strides = [1, 1, 1, 1]} : vector<2x8x10x8xbf16> to vector<2x8x8x8xbf16>
    %41 = vector.extract_strided_slice %39 {offsets = [0, 0, 1, 0], sizes = [2, 8, 8, 8], strides = [1, 1, 1, 1]} : vector<2x8x10x8xbf16> to vector<2x8x8x8xbf16>
    %42 = vector.extract_strided_slice %39 {offsets = [0, 0, 2, 0], sizes = [2, 8, 8, 8], strides = [1, 1, 1, 1]} : vector<2x8x10x8xbf16> to vector<2x8x8x8xbf16>
    %43 = tpu.concatenate %40, %41, %42 in 3 : vector<2x8x8x8xbf16>, vector<2x8x8x8xbf16>, vector<2x8x8x8xbf16> -> vector<2x8x8x24xbf16>
    %44 = vector.shape_cast %43 : vector<2x8x8x24xbf16> to vector<128x24xbf16>
    %c0_18 = arith.constant 0 : index
    %c0_19 = arith.constant 0 : index
    %c0_20 = arith.constant 0 : index
    %45 = vector.load %arg5[%c0_18, %c0_19, %c0_20] : memref<3x24x8xbf16, #tpu.memory_space<vmem>>, vector<1x24x8xbf16>
    %46 = vector.shape_cast %45 : vector<1x24x8xbf16> to vector<24x8xbf16>
    %cst_21 = arith.constant dense<0.000000e+00> : vector<128x8xf32>
    %47 = tpu.matmul %44, %46, %cst_21 {dimension_numbers = #tpu.dot_dimension_numbers<[1], [0], [0], [1], [0, 0, 1, 1], [], []>} : vector<128x24xbf16>, vector<24x8xbf16>, vector<128x8xf32> -> vector<128x8xf32>
    %48 = arith.addf %38, %47 : vector<128x8xf32>
    %49 = vector.extract_strided_slice %37 {offsets = [0, 1, 0, 0], sizes = [2, 8, 10, 8], strides = [1, 1, 1, 1]} : vector<2x10x10x8xbf16> to vector<2x8x10x8xbf16>
    %50 = vector.extract_strided_slice %49 {offsets = [0, 0, 0, 0], sizes = [2, 8, 8, 8], strides = [1, 1, 1, 1]} : vector<2x8x10x8xbf16> to vector<2x8x8x8xbf16>
    %51 = vector.extract_strided_slice %49 {offsets = [0, 0, 1, 0], sizes = [2, 8, 8, 8], strides = [1, 1, 1, 1]} : vector<2x8x10x8xbf16> to vector<2x8x8x8xbf16>
    %52 = vector.extract_strided_slice %49 {offsets = [0, 0, 2, 0], sizes = [2, 8, 8, 8], strides = [1, 1, 1, 1]} : vector<2x8x10x8xbf16> to vector<2x8x8x8xbf16>
    %53 = tpu.concatenate %50, %51, %52 in 3 : vector<2x8x8x8xbf16>, vector<2x8x8x8xbf16>, vector<2x8x8x8xbf16> -> vector<2x8x8x24xbf16>
    %54 = vector.shape_cast %53 : vector<2x8x8x24xbf16> to vector<128x24xbf16>
    %c1 = arith.constant 1 : index
    %c0_22 = arith.constant 0 : index
    %c0_23 = arith.constant 0 : index
    %55 = vector.load %arg5[%c1, %c0_22, %c0_23] : memref<3x24x8xbf16, #tpu.memory_space<vmem>>, vector<1x24x8xbf16>
    %56 = vector.shape_cast %55 : vector<1x24x8xbf16> to vector<24x8xbf16>
    %cst_24 = arith.constant dense<0.000000e+00> : vector<128x8xf32>
    %57 = tpu.matmul %54, %56, %cst_24 {dimension_numbers = #tpu.dot_dimension_numbers<[1], [0], [0], [1], [0, 0, 1, 1], [], []>} : vector<128x24xbf16>, vector<24x8xbf16>, vector<128x8xf32> -> vector<128x8xf32>
    %58 = arith.addf %48, %57 : vector<128x8xf32>
    %59 = vector.extract_strided_slice %37 {offsets = [0, 2, 0, 0], sizes = [2, 8, 10, 8], strides = [1, 1, 1, 1]} : vector<2x10x10x8xbf16> to vector<2x8x10x8xbf16>
    %60 = vector.extract_strided_slice %59 {offsets = [0, 0, 0, 0], sizes = [2, 8, 8, 8], strides = [1, 1, 1, 1]} : vector<2x8x10x8xbf16> to vector<2x8x8x8xbf16>
    %61 = vector.extract_strided_slice %59 {offsets = [0, 0, 1, 0], sizes = [2, 8, 8, 8], strides = [1, 1, 1, 1]} : vector<2x8x10x8xbf16> to vector<2x8x8x8xbf16>
    %62 = vector.extract_strided_slice %59 {offsets = [0, 0, 2, 0], sizes = [2, 8, 8, 8], strides = [1, 1, 1, 1]} : vector<2x8x10x8xbf16> to vector<2x8x8x8xbf16>
    %63 = tpu.concatenate %60, %61, %62 in 3 : vector<2x8x8x8xbf16>, vector<2x8x8x8xbf16>, vector<2x8x8x8xbf16> -> vector<2x8x8x24xbf16>
    %64 = vector.shape_cast %63 : vector<2x8x8x24xbf16> to vector<128x24xbf16>
    %c2 = arith.constant 2 : index
    %c0_25 = arith.constant 0 : index
    %c0_26 = arith.constant 0 : index
    %65 = vector.load %arg5[%c2, %c0_25, %c0_26] : memref<3x24x8xbf16, #tpu.memory_space<vmem>>, vector<1x24x8xbf16>
    %66 = vector.shape_cast %65 : vector<1x24x8xbf16> to vector<24x8xbf16>
    %cst_27 = arith.constant dense<0.000000e+00> : vector<128x8xf32>
    %67 = tpu.matmul %64, %66, %cst_27 {dimension_numbers = #tpu.dot_dimension_numbers<[1], [0], [0], [1], [0, 0, 1, 1], [], []>} : vector<128x24xbf16>, vector<24x8xbf16>, vector<128x8xf32> -> vector<128x8xf32>
    %68 = arith.addf %58, %67 : vector<128x8xf32>
    %cst_28 = arith.constant dense<0.000000e+00> : vector<8xf32>
    %69 = vector.multi_reduction <add>, %68, %cst_28 [0] : vector<128x8xf32> to vector<8xf32>
    %70 = vector.shape_cast %69 : vector<8xf32> to vector<1x8xf32>
    %71 = arith.mulf %68, %68 : vector<128x8xf32>
    %cst_29 = arith.constant dense<0.000000e+00> : vector<8xf32>
    %72 = vector.multi_reduction <add>, %71, %cst_29 [0] : vector<128x8xf32> to vector<8xf32>
    %73 = vector.shape_cast %72 : vector<8xf32> to vector<1x8xf32>
    %74 = tpu.concatenate %70, %73 in 0 : vector<1x8xf32>, vector<1x8xf32> -> vector<2x8xf32>
    %c0_30 = arith.constant 0 : index
    %c0_31 = arith.constant 0 : index
    %75 = vector.load %arg6[%c0_30, %c0_31] : memref<1x8xf32, #tpu.memory_space<vmem>>, vector<1x8xf32>
    %c0_32 = arith.constant 0 : index
    %c0_33 = arith.constant 0 : index
    %76 = vector.load %arg7[%c0_32, %c0_33] : memref<1x8xf32, #tpu.memory_space<vmem>>, vector<1x8xf32>
    %77 = vector.extract_strided_slice %74 {offsets = [0, 0], sizes = [1, 8], strides = [1, 1]} : vector<2x8xf32> to vector<1x8xf32>
    %cst_34 = arith.constant 7.812500e-03 : f32
    %78 = vector.broadcast %cst_34 : f32 to vector<1x8xf32>
    %79 = arith.mulf %77, %78 : vector<1x8xf32>
    %80 = vector.extract_strided_slice %74 {offsets = [1, 0], sizes = [1, 8], strides = [1, 1]} : vector<2x8xf32> to vector<1x8xf32>
    %cst_35 = arith.constant 7.812500e-03 : f32
    %81 = vector.broadcast %cst_35 : f32 to vector<1x8xf32>
    %82 = arith.mulf %80, %81 : vector<1x8xf32>
    %83 = arith.mulf %79, %79 : vector<1x8xf32>
    %84 = arith.subf %82, %83 : vector<1x8xf32>
    %cst_36 = arith.constant 9.99999974E-6 : f32
    %85 = vector.broadcast %cst_36 : f32 to vector<1x8xf32>
    %86 = arith.addf %84, %85 : vector<1x8xf32>
    %87 = math.rsqrt %86 : vector<1x8xf32>
    %88 = arith.mulf %75, %87 : vector<1x8xf32>
    %89 = arith.mulf %79, %88 : vector<1x8xf32>
    %90 = arith.subf %76, %89 : vector<1x8xf32>
    %91 = vector.broadcast %88 : vector<1x8xf32> to vector<128x8xf32>
    %92 = arith.mulf %68, %91 : vector<128x8xf32>
    %93 = vector.broadcast %90 : vector<1x8xf32> to vector<128x8xf32>
    %94 = arith.addf %92, %93 : vector<128x8xf32>
    %cst_37 = arith.constant 0.000000e+00 : f32
    %95 = vector.broadcast %cst_37 : f32 to vector<128x8xf32>
    %96 = arith.maximumf %94, %95 : vector<128x8xf32>
    %97 = arith.truncf %96 : vector<128x8xf32> to vector<128x8xbf16>
    %c0_38 = arith.constant 0 : index
    %c0_39 = arith.constant 0 : index
    %98 = vector.load %arg8[%c0_38, %c0_39] : memref<8x32xbf16, #tpu.memory_space<vmem>>, vector<8x32xbf16>
    %cst_40 = arith.constant dense<0.000000e+00> : vector<128x32xf32>
    %99 = tpu.matmul %97, %98, %cst_40 {dimension_numbers = #tpu.dot_dimension_numbers<[1], [0], [0], [1], [0, 0, 1, 1], [], []>} : vector<128x8xbf16>, vector<8x32xbf16>, vector<128x32xf32> -> vector<128x32xf32>
    %cst_41 = arith.constant dense<0.000000e+00> : vector<32xf32>
    %100 = vector.multi_reduction <add>, %99, %cst_41 [0] : vector<128x32xf32> to vector<32xf32>
    %101 = vector.shape_cast %100 : vector<32xf32> to vector<1x32xf32>
    %102 = arith.mulf %99, %99 : vector<128x32xf32>
    %cst_42 = arith.constant dense<0.000000e+00> : vector<32xf32>
    %103 = vector.multi_reduction <add>, %102, %cst_42 [0] : vector<128x32xf32> to vector<32xf32>
    %104 = vector.shape_cast %103 : vector<32xf32> to vector<1x32xf32>
    %105 = tpu.concatenate %101, %104 in 0 : vector<1x32xf32>, vector<1x32xf32> -> vector<2x32xf32>
    %c0_43 = arith.constant 0 : index
    %c0_44 = arith.constant 0 : index
    %106 = vector.load %arg9[%c0_43, %c0_44] : memref<1x32xf32, #tpu.memory_space<vmem>>, vector<1x32xf32>
    %c0_45 = arith.constant 0 : index
    %c0_46 = arith.constant 0 : index
    %107 = vector.load %arg10[%c0_45, %c0_46] : memref<1x32xf32, #tpu.memory_space<vmem>>, vector<1x32xf32>
    %108 = vector.extract_strided_slice %105 {offsets = [0, 0], sizes = [1, 32], strides = [1, 1]} : vector<2x32xf32> to vector<1x32xf32>
    %cst_47 = arith.constant 7.812500e-03 : f32
    %109 = vector.broadcast %cst_47 : f32 to vector<1x32xf32>
    %110 = arith.mulf %108, %109 : vector<1x32xf32>
    %111 = vector.extract_strided_slice %105 {offsets = [1, 0], sizes = [1, 32], strides = [1, 1]} : vector<2x32xf32> to vector<1x32xf32>
    %cst_48 = arith.constant 7.812500e-03 : f32
    %112 = vector.broadcast %cst_48 : f32 to vector<1x32xf32>
    %113 = arith.mulf %111, %112 : vector<1x32xf32>
    %114 = arith.mulf %110, %110 : vector<1x32xf32>
    %115 = arith.subf %113, %114 : vector<1x32xf32>
    %cst_49 = arith.constant 9.99999974E-6 : f32
    %116 = vector.broadcast %cst_49 : f32 to vector<1x32xf32>
    %117 = arith.addf %115, %116 : vector<1x32xf32>
    %118 = math.rsqrt %117 : vector<1x32xf32>
    %119 = arith.mulf %106, %118 : vector<1x32xf32>
    %120 = arith.mulf %110, %119 : vector<1x32xf32>
    %121 = arith.subf %107, %120 : vector<1x32xf32>
    %122 = vector.broadcast %119 : vector<1x32xf32> to vector<128x32xf32>
    %123 = arith.mulf %99, %122 : vector<128x32xf32>
    %124 = vector.broadcast %121 : vector<1x32xf32> to vector<128x32xf32>
    %125 = arith.addf %123, %124 : vector<128x32xf32>
    %126 = arith.extf %1 : vector<128x32xbf16> to vector<128x32xf32>
    %127 = arith.addf %125, %126 : vector<128x32xf32>
    %cst_50 = arith.constant 0.000000e+00 : f32
    %128 = vector.broadcast %cst_50 : f32 to vector<128x32xf32>
    %129 = arith.maximumf %127, %128 : vector<128x32xf32>
    %130 = vector.shape_cast %129 : vector<128x32xf32> to vector<2x8x8x32xf32>
    %c0_51 = arith.constant 0 : index
    %c0_52 = arith.constant 0 : index
    %c0_53 = arith.constant 0 : index
    %c0_54 = arith.constant 0 : index
    %131 = vector.load %arg15[%c0_51, %c0_52, %c0_53, %c0_54] : memref<2x8x8x32xf32, #tpu.memory_space<vmem>>, vector<2x8x8x32xf32>
    tpu.vector_store %arg15[%c0_51, %c0_52, %c0_53, %c0_54], %130 {strides = array<i32>} : memref<2x8x8x32xf32, #tpu.memory_space<vmem>>, vector<2x8x8x32xf32>,
    return
  }
  func.func @transform_0(%arg0: i32) -> (i32, i32, i32, i32) {
    %c0_i32 = arith.constant 0 : i32
    %c0_i32_0 = arith.constant 0 : i32
    %c0_i32_1 = arith.constant 0 : i32
    %c0_i32_2 = arith.constant 0 : i32
    %c0_i32_3 = arith.constant 0 : i32
    return %c0_i32, %c0_i32_0, %c0_i32_1, %c0_i32_2 : i32, i32, i32, i32
  }
  func.func @transform_1(%arg0: i32) -> (i32, i32) {
    %c0_i32 = arith.constant 0 : i32
    %c0_i32_0 = arith.constant 0 : i32
    %c0_i32_1 = arith.constant 0 : i32
    return %c0_i32, %c0_i32_0 : i32, i32
  }
  func.func @transform_2(%arg0: i32) -> (i32, i32) {
    %c0_i32 = arith.constant 0 : i32
    %c0_i32_0 = arith.constant 0 : i32
    %c0_i32_1 = arith.constant 0 : i32
    return %c0_i32, %c0_i32_0 : i32, i32
  }
  func.func @transform_3(%arg0: i32) -> (i32, i32) {
    %c0_i32 = arith.constant 0 : i32
    %c0_i32_0 = arith.constant 0 : i32
    %c0_i32_1 = arith.constant 0 : i32
    return %c0_i32, %c0_i32_0 : i32, i32
  }
  func.func @transform_4(%arg0: i32) -> (i32, i32, i32) {
    %c0_i32 = arith.constant 0 : i32
    %c0_i32_0 = arith.constant 0 : i32
    %c0_i32_1 = arith.constant 0 : i32
    %c0_i32_2 = arith.constant 0 : i32
    return %c0_i32, %c0_i32_0, %c0_i32_1 : i32, i32, i32
  }
  func.func @transform_5(%arg0: i32) -> (i32, i32) {
    %c0_i32 = arith.constant 0 : i32
    %c0_i32_0 = arith.constant 0 : i32
    %c0_i32_1 = arith.constant 0 : i32
    return %c0_i32, %c0_i32_0 : i32, i32
  }
  func.func @transform_6(%arg0: i32) -> (i32, i32) {
    %c0_i32 = arith.constant 0 : i32
    %c0_i32_0 = arith.constant 0 : i32
    %c0_i32_1 = arith.constant 0 : i32
    return %c0_i32, %c0_i32_0 : i32, i32
  }
  func.func @transform_7(%arg0: i32) -> (i32, i32) {
    %c0_i32 = arith.constant 0 : i32
    %c0_i32_0 = arith.constant 0 : i32
    %c0_i32_1 = arith.constant 0 : i32
    return %c0_i32, %c0_i32_0 : i32, i32
  }
  func.func @transform_8(%arg0: i32) -> (i32, i32) {
    %c0_i32 = arith.constant 0 : i32
    %c0_i32_0 = arith.constant 0 : i32
    %c0_i32_1 = arith.constant 0 : i32
    return %c0_i32, %c0_i32_0 : i32, i32
  }
  func.func @transform_9(%arg0: i32) -> (i32, i32) {
    %c0_i32 = arith.constant 0 : i32
    %c0_i32_0 = arith.constant 0 : i32
    %c0_i32_1 = arith.constant 0 : i32
    return %c0_i32, %c0_i32_0 : i32, i32
  }
  func.func @transform_10(%arg0: i32) -> (i32, i32) {
    %c0_i32 = arith.constant 0 : i32
    %c0_i32_0 = arith.constant 0 : i32
    %c0_i32_1 = arith.constant 0 : i32
    return %c0_i32, %c0_i32_0 : i32, i32
  }
  func.func @transform_11(%arg0: i32) -> (i32, i32) {
    %c0_i32 = arith.constant 0 : i32
    %c0_i32_0 = arith.constant 0 : i32
    %c0_i32_1 = arith.constant 0 : i32
    return %c0_i32, %c0_i32_0 : i32, i32
  }
  func.func @transform_12(%arg0: i32) -> (i32, i32) {
    %c0_i32 = arith.constant 0 : i32
    %c0_i32_0 = arith.constant 0 : i32
    %c0_i32_1 = arith.constant 0 : i32
    return %c0_i32, %c0_i32_0 : i32, i32
  }
  func.func @transform_13(%arg0: i32) -> (i32, i32) {
    %c0_i32 = arith.constant 0 : i32
    %c0_i32_0 = arith.constant 0 : i32
    %c0_i32_1 = arith.constant 0 : i32
    return %c0_i32, %c0_i32_0 : i32, i32
  }
  func.func @transform_14(%arg0: i32) -> (i32, i32, i32, i32) {
    %c0_i32 = arith.constant 0 : i32
    %c0_i32_0 = arith.constant 0 : i32
    %c0_i32_1 = arith.constant 0 : i32
    %c0_i32_2 = arith.constant 0 : i32
    %c0_i32_3 = arith.constant 0 : i32
    return %c0_i32, %c0_i32_0, %c0_i32_1, %c0_i32_2 : i32, i32, i32, i32
  }
}

</mosaic_0001>

<bundles_post_ra>
// kernel: bottleneck_gl_forward.1
= control target key start
LH: loop header
LB: loop body
LE: loop exit
PB: predicated region body
PF: predicated region fallthrough
CT: control target
= control target key end

     0   :  { %vm121_vm0 = vcmask 261120   ;;  %s3285_s0 = inlined_call_operand.vmem [shape: bf16[2,8,8,32], index: 0, kind: input, shape index: {}]   ;;  %s3286_s1 = inlined_call_operand.vmem [shape: bf16[32,8], index: 1, kind: input, shape index: {}]   ;;  %s3287_s2 = inlined_call_operand.vmem [shape: f32[1,8], index: 2, kind: input, shape index: {}]   ;;  %s3288_s3 = inlined_call_operand.vmem [shape: f32[1,8], index: 3, kind: input, shape index: {}]   ;;  %s3289_s4 = inlined_call_operand.vmem [shape: bf16[3,24,8], index: 4, kind: input, shape index: {}]   ;;  %s3290_s5 = inlined_call_operand.vmem [shape: f32[1,8], index: 5, kind: input, shape index: {}]   ;;  %s3291_s6 = inlined_call_operand.vmem [shape: f32[1,8], index: 6, kind: input, shape index: {}]   ;;  %s3292_s7 = inlined_call_operand.vmem [shape: bf16[8,32], index: 7, kind: input, shape index: {}]   ;;  %s3293_s8 = inlined_call_operand.vmem [shape: f32[1,32], index: 8, kind: input, shape index: {}]   ;;  %s3294_s9 = inlined_call_operand.vmem [shape: f32[1,32], index: 9, kind: input, shape index: {}]   ;;  %s3295_s10 = inlined_call_operand.vmem [shape: f32[32,2], index: 10, kind: input, shape index: {}]   ;;  %s3296_s11 = inlined_call_operand.vmem [shape: f32[1,2], index: 11, kind: input, shape index: {}]   ;;  %s3297_s12 = inlined_call_operand.vmem [shape: f32[2,32], index: 12, kind: input, shape index: {}]   ;;  %s3298_s13 = inlined_call_operand.vmem [shape: f32[1,32], index: 13, kind: input, shape index: {}]   ;;  %s3299_s14 = inlined_call_operand.hbm [shape: f32[2,8,8,32], index: 14, kind: output, shape index: {}]  }
   0x1   :  { %v2224_v0 = vld [vmem:[%s3286_s1 + $0x8] sm:$0xff]   ;;  %v2225_v1 = vld [vmem:[%s3286_s1] sm:$0xff]   ;;  %v53_v6 = vld [vmem:[%s3285_s0 + $0x10] sm:$0xff]  }
   0x2   :  { %2112 = vmatprep.subr.bf16.mxu0 %v2224_v0  ;;  %v49_v2 = vld [vmem:[%s3285_s0] sm:$0xff]   ;;  %2210 = vmatprep.subr.bf16.mxu1 %v2224_v0  ;;  %v51_v3 = vld [vmem:[%s3285_s0 + $0x8] sm:$0xff]   ;;  %v61_v7 = vld [vmem:[%s3285_s0 + $0x30] sm:$0xff]  }
   0x3   :  { %2113 = vmatpush3.bf16.msra.mxu0 %v2224_v0  ;;  %2212 = vmatpush3.bf16.msra.mxu1 %v2224_v0  ;;  %v57_v4 = vld [vmem:[%s3285_s0 + $0x20] sm:$0xff]   ;;  %v59_v5 = vld [vmem:[%s3285_s0 + $0x28] sm:$0xff]  }
   0x4   :  { %2114 = vmatprep.subr.bf16.mxu0 %v2225_v1  ;;  %2211 = vmatprep.subr.bf16.mxu1 %v2225_v1 }
   0x5   :  { %2116 = vmatprep.mubr.msk.bf16.mxu0 %vm121_vm0, %v49_v2 }
   0x7   :  { %2115 = vmatpush3.bf16.msra.mxu0 %v2225_v1  ;;  %2213 = vmatpush3.bf16.msra.mxu1 %v2225_v1 }
   0x8   :  { %19 = vsyncpa [#allocation3], 0  ;;  %2124 = vmatprep.mubr.msk.bf16.mxu1 %vm121_vm0, %v57_v4  ;;  %v55_v8 = vld [vmem:[%s3285_s0 + $0x18] sm:$0xff]   ;;  %vm243_vm1 = vcmask 64512   ;;  %vm334_vm2 = vcmask 1040384   ;;  %vm621_vm4 = vcmask 1044480  }
   0x9   :  { %v63_v9 = vld [vmem:[%s3285_s0 + $0x38] sm:$0xff]   ;;  %vm603_vm3 = vsmask.f32 256  ;;  %vm622_vm5 = vsmask.f32 4352  ;;  %s2286_s10 = smov 8  }
   0xa   :  { %2117 = vmatmul.mubr.msk.bf16.vlgmr.msra.gmra.mxu0 %vm121_vm0, %v51_v3  ;;  %2125 = vmatmul.mubr.msk.bf16.vlgmr.msra.gmra.mxu1 %vm121_vm0, %v59_v5  ;;  %vm2580_vm6 = vmand %vm334_vm2, %vm603_vm3  ;;  %vm1011_vm8 = vcmask 1043456   ;;  %vm865_vm9 = vcmask 130048   ;;  %vm986_vm10 = vcmask 195584  }
   0xb   :  { %2120 = vmatprep.mubr.msk.bf16.mxu0 %vm121_vm0, %v53_v6  ;;  %2128 = vmatprep.mubr.msk.bf16.mxu1 %vm121_vm0, %v61_v7  ;;  %vm2586_vm7 = vmand %vm621_vm4, %vm622_vm5 }
  0x12   :  { %2121 = vmatmul.mubr.msk.bf16.gmra.mxu0 %vm121_vm0, %v55_v8  ;;  %2129 = vmatmul.mubr.msk.bf16.gmra.mxu1 %vm121_vm0, %v63_v9 }
  0xca   :  { %v2403_v10 = vpop.f32.mrf.mxu0  ;;  %v2405_v11 = vpop.f32.mrf.mxu1 }
  0xcb   :  { %v283_v18 = vmul.f32 %v2403_v10, %v2403_v10  ;;  %v247_v24 = vsel %vm243_vm1, %v2403_v10, 0.0  ;;  %v291_v3 = vmul.f32 %v2405_v11, %v2405_v11  ;;  %v263_v8 = vsel %vm243_vm1, %v2405_v11, 0.0 }
  0xcc   :  { %v2407_v12 = vpop.f32.mrf.mxu0  ;;  %v2409_v13 = vpop.f32.mrf.mxu1 }
  0xcd   :  { %v281_v15 = vmul.f32 %v2407_v12, %v2407_v12  ;;  %v244_v19 = vsel %vm243_vm1, %v2407_v12, 0.0  ;;  %v300_v32 = vsel %vm243_vm1, %v283_v18, 0.0  ;;  %v289_v58 = vmul.f32 %v2409_v13, %v2409_v13 }
  0xce   :  { %v2411_v14 = vpop.f32.mrf.mxu0  ;;  %v2417_v17 = vpop.f32.mrf.mxu1  ;;  %v259_v62 = vsel %vm243_vm1, %v2409_v13, 0.0 }
  0xcf   :  { %v297_v25 = vsel %vm243_vm1, %v281_v15, 0.0  ;;  %v284_v26 = vmul.f32 %v2411_v14, %v2411_v14  ;;  %v249_v33 = vsel %vm243_vm1, %v2411_v14, 0.0  ;;  %v312_v4 = vsel %vm243_vm1, %v289_v58, 0.0 }
  0xd0   :  { %v2415_v16 = vpop.f32.mrf.mxu0  ;;  %v2437_v31 = vpop.f32.mrf.mxu1  ;;  %v292_v9 = vmul.f32 %v2417_v17, %v2417_v17 }
  0xd1   :  { %v245_v20 = vsel %vm243_vm1, %v2415_v16, 0.0  ;;  %v282_v21 = vmul.f32 %v2415_v16, %v2415_v16  ;;  %v302_v38 = vsel %vm243_vm1, %v284_v26, 0.0  ;;  %v290_v63 = vmul.f32 %v2437_v31, %v2437_v31 }
  0xd2   :  { %v246_v22 = vadd.f32 %v245_v20, %v244_v19  ;;  %v2427_v23 = vpop.f32.mrf.mxu0  ;;  %v2451_v43 = vpop.f32.mrf.mxu1  ;;  %v261_v5 = vsel %vm243_vm1, %v2437_v31, 0.0 }
  0xd3   :  { %v298_v27 = vsel %vm243_vm1, %v282_v21, 0.0  ;;  %v287_v44 = vmul.f32 %v2427_v23, %v2427_v23  ;;  %v255_v50 = vsel %vm243_vm1, %v2427_v23, 0.0  ;;  %v314_v15 = vsel %vm243_vm1, %v290_v63, 0.0 }
  0xd4   :  { %v248_v28 = vadd.f32 %v247_v24, %v246_v22  ;;  %v299_v29 = vadd.f32 %v298_v27, %v297_v25  ;;  %v2435_v30 = vpop.f32.mrf.mxu0  ;;  %v2465_v55 = vpop.f32.mrf.mxu1  ;;  %v316_v21 = vsel %vm243_vm1, %v291_v3, 0.0  ;;  %v265_v22 = vsel %vm243_vm1, %v2417_v17, 0.0 }
  0xd5   :  { %v285_v34 = vmul.f32 %v2435_v30, %v2435_v30  ;;  %v251_v39 = vsel %vm243_vm1, %v2435_v30, 0.0  ;;  %v308_v56 = vsel %vm243_vm1, %v287_v44, 0.0  ;;  %v293_v24 = vmul.f32 %v2465_v55, %v2465_v55 }
  0xd6   :  { %v301_v35 = vadd.f32 %v300_v32, %v299_v29  ;;  %v250_v36 = vadd.f32 %v249_v33, %v248_v28  ;;  %v2444_v37 = vpop.f32.mrf.mxu0  ;;  %v2477_v2 = vpop.f32.mrf.mxu1  ;;  %v318_v27 = vsel %vm243_vm1, %v292_v9, 0.0  ;;  %v267_v28 = vsel %vm243_vm1, %v2465_v55, 0.0 }
  0xd7   :  { %v304_v45 = vsel %vm243_vm1, %v285_v34, 0.0  ;;  %v288_v51 = vmul.f32 %v2444_v37, %v2444_v37  ;;  %v257_v57 = vsel %vm243_vm1, %v2444_v37, 0.0  ;;  %v295_v34 = vmul.f32 %v2451_v43, %v2451_v43 }
  0xd8   :  { %v252_v40 = vadd.f32 %v251_v39, %v250_v36  ;;  %v303_v41 = vadd.f32 %v302_v38, %v301_v35  ;;  %v2449_v42 = vpop.f32.mrf.mxu0  ;;  %v2489_v20 = vpop.f32.mrf.mxu1  ;;  %v320_v35 = vsel %vm243_vm1, %v293_v24, 0.0  ;;  %v2284_v9 = vmov 1966171168  }
  0xd9   :  { %v253_v46 = vsel %vm243_vm1, %v2449_v42, 0.0  ;;  %v286_v47 = vmul.f32 %v2449_v42, %v2449_v42  ;;  %v310_v61 = vsel %vm243_vm1, %v288_v51, 0.0  ;;  %v294_v29 = vmul.f32 %v2489_v20, %v2489_v20 }
  0xda   :  { %v305_v48 = vadd.f32 %v304_v45, %v303_v41  ;;  %v254_v49 = vadd.f32 %v253_v46, %v252_v40  ;;  %v269_v36 = vsel %vm243_vm1, %v2489_v20, 0.0  ;;  %v271_v40 = vsel %vm243_vm1, %v2451_v43, 0.0 }
  0xdb   :  { %v306_v52 = vsel %vm243_vm1, %v286_v47, 0.0  ;;  %v296_v41 = vmul.f32 %v2477_v2, %v2477_v2  ;;  %v322_v44 = vsel %vm243_vm1, %v294_v29, 0.0  ;;  %v324_v47 = vsel %vm243_vm1, %v295_v34, 0.0 }
  0xdc   :  { %v256_v53 = vadd.f32 %v255_v50, %v254_v49  ;;  %v307_v54 = vadd.f32 %v306_v52, %v305_v48  ;;  %v273_v48 = vsel %vm243_vm1, %v2477_v2, 0.0 }
  0xdd   :  { %v326_v51 = vsel %vm243_vm1, %v296_v41, 0.0 }
  0xde   :  { %v309_v59 = vadd.f32 %v308_v56, %v307_v54  ;;  %v258_v60 = vadd.f32 %v257_v57, %v256_v53 }
  0xe0   :  { %v260_v0 = vadd.f32 %v259_v62, %v258_v60  ;;  %v311_v1 = vadd.f32 %v310_v61, %v309_v59 }
  0xe2   :  { %v262_v6 = vadd.f32 %v261_v5, %v260_v0  ;;  %v313_v7 = vadd.f32 %v312_v4, %v311_v1 }
  0xe4   :  { %v264_v18 = vadd.f32 %v263_v8, %v262_v6  ;;  %v315_v19 = vadd.f32 %v314_v15, %v313_v7  ;;  %v348_v15 = vunpack.c.l.s4 %v2284_v9 }
  0xe6   :  { %v317_v25 = vadd.f32 %v316_v21, %v315_v19  ;;  %v266_v26 = vadd.f32 %v265_v22, %v264_v18  ;;  %v350_v18 = vlaneseq  ;;  %v349_v19 = vunpack.c.0.s8 %v348_v15 }
  0xe8   :  { %v268_v32 = vadd.f32 %v267_v28, %v266_v26  ;;  %v319_v33 = vadd.f32 %v318_v27, %v317_v25  ;;  %v351_v21 = vshrl.u32 %v350_v18, 7  ;;  %v336_v27 = vld [vmem:[%s3287_s2] sm:$0x1]  ;;  %s2285_s2 = smov 16  }
  0xea   :  { %v321_v38 = vadd.f32 %v320_v35, %v319_v33  ;;  %v270_v39 = vadd.f32 %v269_v36, %v268_v32  ;;  %v2516_v22 = vsub.s32 %v349_v19, %v351_v21  ;;  %v2523_v29 = vsub.s32 0, %v351_v21  ;;  %v337_v33 = vld [vmem:[%s3288_s3] sm:$0x1] }
  0xec   :  { %v272_v45 = vadd.f32 %v271_v40, %v270_v39  ;;  %v323_v46 = vadd.f32 %v322_v44, %v321_v38 }
  0xee   :  { %v274_v49 = vadd.f32 %v273_v48, %v272_v45  ;;  %v325_v50 = vadd.f32 %v324_v47, %v323_v46 }
  0xf0   :  { %v275_v52 = vrot.slane %v274_v49, 4  ;;  %v327_v53 = vadd.f32 %v326_v51, %v325_v50 }
  0xf2   :  { %v276_v54 = vadd.f32 %v275_v52, %v274_v49  ;;  %v328_v56 = vrot.slane %v327_v53, 4 }
  0xf4   :  { %v277_v57 = vrot.slane %v276_v54, 2  ;;  %v329_v58 = vadd.f32 %v328_v56, %v327_v53 }
  0xf6   :  { %v278_v59 = vadd.f32 %v277_v57, %v276_v54  ;;  %v330_v60 = vrot.slane %v329_v58, 2 }
  0xf8   :  { %v279_v61 = vrot.slane %v278_v59, 1  ;;  %v331_v62 = vadd.f32 %v330_v60, %v329_v58 }
  0xfa   :  { %v332_v63 = vrot.slane %v331_v62, 1  ;;  %v280_v0 = vadd.f32 %v279_v61, %v278_v59 }
  0xfc   :  { %v333_v1 = vadd.f32 %v332_v63, %v331_v62 }
  0xfe   :  { %v335_v3 = vsel %vm334_vm2, %v280_v0, %v333_v1 }
  0xff   :  { %v338_v4 = vmul.f32 0.0078125, %v335_v3 }
 0x101   :  { %v339_v5 = vmul.f32 %v338_v4, %v338_v4 }
 0x103   :  { %v341_v6 = vrot.slane %v339_v5, 7 }
 0x105   :  { %v343_v7 = vsub.f32 %v338_v4, %v341_v6 }
 0x107   :  { %v344_v8 = vadd.f32 1e-05, %v343_v7 }
 0x109   :  { %2248 = vrsqrt.f32 %v344_v8 }
 0x116   :  { %v2249_v24 = vpop.eup %2248 }
 0x117   :  { %v353_v25 = vrot.slane %v2249_v24, %v2516_v22 }
 0x119   :  { %v354_v26 = vcombine.high %v353_v25, %v353_v25 }
 0x11b   :  { %v361_v28 = vrot.slane %v354_v26, %v2516_v22 }
 0x11d   :  { %v363_v32 = vmul.f32 %v361_v28, %v336_v27 }
 0x11f   :  { %v364_v34 = vmul.f32 %v363_v32, %v338_v4  ;;  %v2529_v35 = vrot.slane %v363_v32, %v2523_v29 }
 0x121   :  { %v365_v36 = vsub.f32 %v337_v33, %v364_v34  ;;  %v385_v38 = vmul.f32 %v2529_v35, %v2489_v20  ;;  %v373_v39 = vmul.f32 %v2529_v35, %v2415_v16  ;;  %v372_v40 = vmul.f32 %v2529_v35, %v2407_v12 }
 0x122   :  { %v375_v44 = vmul.f32 %v2411_v14, %v2529_v35  ;;  %v374_v45 = vmul.f32 %v2403_v10, %v2529_v35  ;;  %v376_v46 = vmul.f32 %v2529_v35, %v2435_v30  ;;  %v377_v16 = vmul.f32 %v2529_v35, %v2449_v42 }
 0x123   :  { %v2538_v41 = vrot.slane %v365_v36, %v2523_v29  ;;  %v379_v12 = vmul.f32 %v2444_v37, %v2529_v35  ;;  %v2552_v20 = vmul.f32 %v2427_v23, %v2529_v35  ;;  %v2556_v14 = vmul.f32 %v2529_v35, %v2437_v31 }
 0x124   :  { %v380_v61 = vmul.f32 %v2529_v35, %v2409_v13  ;;  %v383_v0 = vmul.f32 %v2417_v17, %v2529_v35  ;;  %v382_v1 = vmul.f32 %v2405_v11, %v2529_v35  ;;  %v2576_v6 = vmul.f32 %v2529_v35, %v2465_v55 }
 0x125   :  { %v407_v10 = vadd.f32 %v2538_v41, %v385_v38  ;;  %v395_v30 = vadd.f32 %v2538_v41, %v373_v39  ;;  %v394_v47 = vadd.f32 %v2538_v41, %v372_v40  ;;  %v397_v48 = vadd.f32 %v2538_v41, %v375_v44 }
 0x126   :  { %v396_v42 = vadd.f32 %v2538_v41, %v374_v45  ;;  %v398_v37 = vadd.f32 %v2538_v41, %v376_v46  ;;  %v399_v49 = vadd.f32 %v2538_v41, %v377_v16  ;;  %v401_v23 = vadd.f32 %v2538_v41, %v379_v12 }
 0x127   :  { %v423_v50 = vmax.f32 %v407_v10, 0.0  ;;  %v411_v51 = vmax.f32 %v395_v30, 0.0  ;;  %v410_v31 = vmax.f32 %v394_v47, 0.0  ;;  %v413_v52 = vmax.f32 %v397_v48, 0.0 }
 0x128   :  { %v412_v53 = vmax.f32 %v396_v42, 0.0  ;;  %v414_v54 = vmax.f32 %v398_v37, 0.0  ;;  %v415_v56 = vmax.f32 %v399_v49, 0.0  ;;  %v417_v57 = vmax.f32 %v401_v23, 0.0 }
 0x129   :  { %v2048_v58 = vpack.c.bf16 %v411_v51, %v411_v51  ;;  %v2047_v59 = vpack.c.bf16 %v410_v31, %v410_v31  ;;  %v2050_v60 = vpack.c.bf16 %v413_v52, %v413_v52  ;;  %v2572_v3 = vpack.c.bf16 %v423_v50, %v423_v50 }
 0x12a   :  { %v2049_v62 = vpack.c.bf16 %v412_v53, %v412_v53  ;;  %v2051_v63 = vpack.c.bf16 %v414_v54, %v414_v54  ;;  %v2052_v5 = vpack.c.bf16 %v415_v56, %v415_v56  ;;  %v2054_v13 = vpack.c.bf16 %v417_v57, %v417_v57 }
 0x12b   :  { %v482_v4 = vshrl.u32 %v2048_v58, 16  ;;  %v485_v7 = vshll.u32 %v2048_v58, 16  ;;  %v475_v8 = vshrl.u32 %v2047_v59, 16  ;;  %v496_v9 = vshrl.u32 %v2050_v60, 16 }
 0x12c   :  { %v478_v18 = vshll.u32 %v2047_v59, 16  ;;  %v499_v19 = vshll.u32 %v2050_v60, 16  ;;  %v489_v21 = vshrl.u32 %v2049_v62, 16  ;;  %v492_v25 = vshll.u32 %v2049_v62, 16 }
 0x12d   :  { %v484_v15 = vrot.slane %v482_v4, 7  ;;  %v477_v17 = vrot.slane %v475_v8, 7  ;;  %v498_v24 = vrot.slane %v496_v9, 7  ;;  %v503_v26 = vshrl.u32 %v2051_v63, 16 }
 0x12e   :  { %v491_v28 = vrot.slane %v489_v21, 7  ;;  %v506_v32 = vshll.u32 %v2051_v63, 16  ;;  %v510_v33 = vshrl.u32 %v2052_v5, 16  ;;  %v513_v39 = vshll.u32 %v2052_v5, 16 }
 0x12f   :  { %v487_v55 = vor.u32 %v485_v7, %v484_v15  ;;  %v480_v34 = vor.u32 %v478_v18, %v477_v17  ;;  %v501_v36 = vor.u32 %v499_v19, %v498_v24  ;;  %v505_v38 = vrot.slane %v503_v26, 7 }
 0x130   :  { %v494_v44 = vor.u32 %v492_v25, %v491_v28  ;;  %v512_v45 = vrot.slane %v510_v33, 7  ;;  %v524_v46 = vshrl.u32 %v2054_v13, 16  ;;  %v566_v49 = vshrl.u32 %v2572_v3, 16 }
 0x131   :  { %v606_v40 = vsel %vm2580_vm6, 0, %v487_v55  ;;  %v605_v12 = vsel %vm2580_vm6, 0, %v480_v34  ;;  %v608_v10 = vsel %vm2580_vm6, 0, %v501_v36  ;;  %v508_v30 = vor.u32 %v506_v32, %v505_v38 }
 0x132   :  { %v2594_v16 = vsel %vm2586_vm7, %v606_v40, 0  ;;  %v2603_v48 = vsel %vm2586_vm7, %v605_v12, 0  ;;  %v2607_v42 = vsel %vm2586_vm7, %v608_v10, 0  ;;  %v607_v37 = vsel %vm2580_vm6, 0, %v494_v44 }
 0x133   :  { %v792_v47 = vrot.slane %v2594_v16, 1  ;;  %v791_v23 = vrot.slane %v2603_v48, 1  ;;  %v2615_v50 = vsel %vm2586_vm7, %v607_v37, 0  ;;  %v609_v51 = vsel %vm2580_vm6, 0, %v508_v30 }
 0x134   :  { %v794_v31 = vrot.slane %v2607_v42, 1  ;;  %v2623_v52 = vsel %vm2586_vm7, %v609_v51, 0  ;;  %v515_v53 = vor.u32 %v513_v39, %v512_v45  ;;  %v526_v54 = vrot.slane %v524_v46, 7 }
 0x135   :  { %809 = vrot.lane.b32.xlu1 %v792_v47, %s2285_s2  ;;  %807 = vrot.lane.b32.xlu0 %v791_v23, %s2285_s2  ;;  %v793_v56 = vrot.slane %v2615_v50, 1  ;;  %v527_v57 = vshll.u32 %v2054_v13, 16  ;;  %v400_v58 = vadd.f32 %v2538_v41, %v2552_v20  ;;  %v403_v59 = vadd.f32 %v2538_v41, %v2556_v14 }
 0x136   :  { %v610_v60 = vsel %vm2580_vm6, 0, %v515_v53  ;;  %v402_v62 = vadd.f32 %v2538_v41, %v380_v61  ;;  %v405_v63 = vadd.f32 %v2538_v41, %v383_v0  ;;  %v404_v4 = vadd.f32 %v2538_v41, %v382_v1 }
 0x137   :  { %v795_v5 = vrot.slane %v2623_v52, 1  ;;  %v529_v7 = vor.u32 %v527_v57, %v526_v54  ;;  %v416_v8 = vmax.f32 %v400_v58, 0.0  ;;  %v419_v9 = vmax.f32 %v403_v59, 0.0 }
 0x138   :  { %v2640_v20 = vsel %vm2586_vm7, %v610_v60, 0  ;;  %v418_v14 = vmax.f32 %v402_v62, 0.0  ;;  %v421_v13 = vmax.f32 %v405_v63, 0.0  ;;  %v420_v15 = vmax.f32 %v404_v4, 0.0 }
 0x139   :  { %813 = vrot.lane.b32.xlu1 %v794_v31, %s2285_s2  ;;  %811 = vrot.lane.b32.xlu0 %v793_v56, %s2285_s2  ;;  %v612_v61 = vsel %vm2580_vm6, 0, %v529_v7  ;;  %v2053_v0 = vpack.c.bf16 %v416_v8, %v416_v8  ;;  %v2056_v1 = vpack.c.bf16 %v419_v9, %v419_v9  ;;  %v406_v18 = vadd.f32 %v2538_v41, %v2576_v6 }
 0x13a   :  { %v2649_v19 = vsel %vm2586_vm7, %v612_v61, 0  ;;  %v2055_v21 = vpack.c.bf16 %v418_v14, %v418_v14  ;;  %v2058_v17 = vpack.c.bf16 %v421_v13, %v421_v13  ;;  %v2057_v24 = vpack.c.bf16 %v420_v15, %v420_v15 }
 0x13b   :  { %v796_v25 = vrot.slane %v2640_v20, 1  ;;  %v919_v26 = vrot.slane %v2649_v19, 1  ;;  %v517_v55 = vshrl.u32 %v2053_v0, 16  ;;  %v538_v28 = vshrl.u32 %v2056_v1, 16 }
 0x13c   :  { %v520_v32 = vshll.u32 %v2053_v0, 16  ;;  %v541_v33 = vshll.u32 %v2056_v1, 16  ;;  %v531_v34 = vshrl.u32 %v2055_v21, 16  ;;  %v552_v36 = vshrl.u32 %v2058_v17, 16 }
 0x13d   :  { %815 = vrot.lane.b32.xlu1 %v795_v5, %s2285_s2  ;;  %817 = vrot.lane.b32.xlu0 %v796_v25, %s2285_s2  ;;  %v519_v6 = vrot.slane %v517_v55, 7  ;;  %v540_v38 = vrot.slane %v538_v28, 7  ;;  %v534_v39 = vshll.u32 %v2055_v21, 16  ;;  %v545_v40 = vshrl.u32 %v2057_v24, 16 }
 0x13e   :  { %v533_v44 = vrot.slane %v531_v34, 7  ;;  %v554_v45 = vrot.slane %v552_v36, 7  ;;  %v555_v46 = vshll.u32 %v2058_v17, 16  ;;  %v422_v12 = vmax.f32 %v406_v18, 0.0 }
 0x13f   :  { %v522_v10 = vor.u32 %v520_v32, %v519_v6  ;;  %v543_v30 = vor.u32 %v541_v33, %v540_v38  ;;  %v547_v47 = vrot.slane %v545_v40, 7  ;;  %v548_v37 = vshll.u32 %v2057_v24, 16 }
 0x140   :  { %v536_v23 = vor.u32 %v534_v39, %v533_v44  ;;  %v557_v51 = vor.u32 %v555_v46, %v554_v45  ;;  %v2059_v31 = vpack.c.bf16 %v422_v12, %v422_v12  ;;  %v568_v53 = vrot.slane %v566_v49, 7  ;;  %v2234_v12 = vld [vmem:[%s3289_s4 + $0x14] ss:$0 sps:$4 sm:$0xff]  }
 0x141   :  { %921 = vrot.lane.b32.xlu1 %v919_v26, %s2285_s2  ;;  %v611_v54 = vsel %vm2580_vm6, 0, %v522_v10  ;;  %v614_v56 = vsel %vm2580_vm6, 0, %v543_v30  ;;  %v550_v57 = vor.u32 %v548_v37, %v547_v47  ;;  %v569_v62 = vshll.u32 %v2572_v3, 16  ;;  %2214 = vmatprep.subr.msk.bf16.mxu1 %vm1011_vm8, %v2234_v12 }
 0x142   :  { %v2664_v58 = vsel %vm2586_vm7, %v611_v54, 0  ;;  %v2668_v59 = vsel %vm2586_vm7, %v614_v56, 0  ;;  %v613_v60 = vsel %vm2580_vm6, 0, %v536_v23  ;;  %v616_v49 = vsel %vm2580_vm6, 0, %v557_v51  ;;  %v2235_v51 = vld [vmem:[%s3289_s4 + $0xc] sm:$0xff]  }
 0x143   :  { %v797_v63 = vrot.slane %v2664_v58, 1  ;;  %v799_v4 = vrot.slane %v2668_v59, 1  ;;  %v2679_v5 = vsel %vm2586_vm7, %v613_v60, 0  ;;  %v2683_v7 = vsel %vm2586_vm7, %v616_v49, 0 }
 0x144   :  { %v559_v8 = vshrl.u32 %v2059_v31, 16  ;;  %v571_v9 = vor.u32 %v569_v62, %v568_v53  ;;  %v615_v3 = vsel %vm2580_vm6, 0, %v550_v57  ;;  %v562_v13 = vshll.u32 %v2059_v31, 16 }
 0x145   :  { %819 = vrot.lane.b32.xlu0 %v797_v63, %s2285_s2  ;;  %823 = vrot.lane.b32.xlu1 %v799_v4, %s2285_s2  ;;  %v798_v15 = vrot.slane %v2679_v5, 1  ;;  %v801_v61 = vrot.slane %v2683_v7, 1  ;;  %v2693_v0 = vsel %vm2586_vm7, %v615_v3, 0  ;;  %v664_v18 = vshll.u32 %v2615_v50, 16 }
 0x146   :  { %v561_v14 = vrot.slane %v559_v8, 7  ;;  %v618_v21 = vsel %vm2580_vm6, 0, %v571_v9  ;;  %v800_v24 = vrot.slane %v2693_v0, 1  ;;  %v650_v26 = vshll.u32 %v2603_v48, 16  ;;  %v2749_v8 = vld [vmem:[%s3289_s4 + $0x20] ss:$0 sps:$4 sm:$0xff]  }
 0x147   :  { %v671_v55 = vshll.u32 %v2607_v42, 16  ;;  %v2712_v32 = vsel %vm2586_vm7, %v618_v21, 0  ;;  %v666_v33 = vrot.slane %v664_v18, 1  ;;  %v662_v34 = vshrl.u32 %v2615_v50, 16 }
 0x148   :  { %v564_v1 = vor.u32 %v562_v13, %v561_v14  ;;  %v803_v36 = vrot.slane %v2712_v32, 1  ;;  %v652_v6 = vrot.slane %v650_v26, 1  ;;  %v657_v39 = vshll.u32 %v2594_v16, 16 }
 0x149   :  { %821 = vrot.lane.b32.xlu0 %v798_v15, %s2285_s2  ;;  %827 = vrot.lane.b32.xlu1 %v801_v61, %s2285_s2  ;;  %v673_v38 = vrot.slane %v671_v55, 1  ;;  %v667_v40 = vor.u32 %v666_v33, %v662_v34  ;;  %v685_v44 = vshll.u32 %v2640_v20, 16  ;;  %v648_v45 = vshrl.u32 %v2603_v48, 16 }
 0x14a   :  { %v617_v17 = vsel %vm2580_vm6, 0, %v564_v1  ;;  %v669_v46 = vshrl.u32 %v2607_v42, 16  ;;  %v678_v10 = vshll.u32 %v2623_v52, 16  ;;  %v659_v37 = vrot.slane %v657_v39, 1 }
 0x14b   :  { %v2705_v25 = vsel %vm2586_vm7, %v617_v17, 0  ;;  %v653_v30 = vor.u32 %v652_v6, %v648_v45  ;;  %v387_v23 = vmul.f32 %v2477_v2, %v2529_v35  ;;  %v687_v31 = vrot.slane %v685_v44, 1 }
 0x14c   :  { %v802_v28 = vrot.slane %v2705_v25, 1  ;;  %v674_v47 = vor.u32 %v673_v38, %v669_v46  ;;  %v902_v53 = vshll.u32 %v2649_v19, 16  ;;  %v386_v54 = vmul.f32 %v2451_v43, %v2529_v35 }
 0x14d   :  { %825 = vrot.lane.b32.xlu0 %v800_v24, %s2285_s2  ;;  %v655_v56 = vshrl.u32 %v2594_v16, 16  ;;  %v409_v57 = vadd.f32 %v2538_v41, %v387_v23  ;;  %v1013_v2 = vsel %vm1011_vm8, %v2234_v12, 0  ;;  %v683_v60 = vshrl.u32 %v2640_v20, 16 }
 0x14e   :  { %829 = vrot.lane.b32.xlu1 %v802_v28, %s2285_s2  ;;  %v680_v49 = vrot.slane %v678_v10, 1  ;;  %v408_v62 = vadd.f32 %v2538_v41, %v386_v54  ;;  %2133 = vmatpush3.bf16.msra.mxu1 %v1013_v2  ;;  %v676_v35 = vshrl.u32 %v2623_v52, 16  ;;  %v692_v63 = vshll.u32 %v2664_v58, 16  ;;  %v2237_v54 = vld [vmem:[%s3289_s4 + $0x8] ss:$0 sps:$4 sm:$0xff]  }
 0x14f   :  { %v660_v43 = vor.u32 %v659_v37, %v655_v56  ;;  %v425_v4 = vmax.f32 %v409_v57, 0.0  ;;  %2134 = vmatprep.subr.bf16.mxu1 %v2235_v51  ;;  %v688_v9 = vor.u32 %v687_v31, %v683_v60  ;;  %v904_v3 = vrot.slane %v902_v53, 1  ;;  %2215 = vmatprep.subr.msk.bf16.mxu0 %vm1011_vm8, %v2237_v54 }
 0x150   :  { %v706_v14 = vshll.u32 %v2668_v59, 16  ;;  %v424_v13 = vmax.f32 %v408_v62, 0.0  ;;  %v681_v15 = vor.u32 %v680_v49, %v676_v35  ;;  %v900_v61 = vshrl.u32 %v2649_v19, 16 }
 0x151   :  { %831 = vrot.lane.b32.xlu0 %v803_v36, %s2285_s2  ;;  %v2062_v41 = vpack.c.bf16 %v425_v4, %v425_v4  ;;  %v694_v18 = vrot.slane %v692_v63, 1  ;;  %v699_v21 = vshll.u32 %v2679_v5, 16  ;;  %v720_v17 = vshll.u32 %v2683_v7, 16 }
 0x152   :  { %751 = vrot.lane.b32.xlu1 %v667_v40, %s2286_s10  ;;  %v2061_v1 = vpack.c.bf16 %v424_v13, %v424_v13  ;;  %2135 = vmatpush3.bf16.msra.mxu1 %v2235_v51  ;;  %v905_v26 = vor.u32 %v904_v3, %v900_v61  ;;  %v708_v55 = vrot.slane %v706_v14, 1  ;;  %v690_v33 = vshrl.u32 %v2664_v58, 16 }
 0x153   :  { %v580_v24 = vshrl.u32 %v2062_v41, 16  ;;  %2216 = vmatprep.subr.msk.bf16.mxu1 %vm1011_vm8, %v2749_v8  ;;  %v583_v36 = vshll.u32 %v2062_v41, 16  ;;  %v704_v6 = vshrl.u32 %v2668_v59, 16  ;;  %v713_v38 = vshll.u32 %v2693_v0, 16  ;;  %v2239_v41 = vld [vmem:[%s3289_s4] sm:$0xff]  }
 0x154   :  { %v573_v28 = vshrl.u32 %v2061_v1, 16  ;;  %v576_v40 = vshll.u32 %v2061_v1, 16  ;;  %v695_v44 = vor.u32 %v694_v18, %v690_v33  ;;  %v701_v45 = vrot.slane %v699_v21, 1 }
 0x155   :  { %747 = vrot.lane.b32.xlu0 %v653_v30, %s2286_s10  ;;  %v582_v34 = vrot.slane %v580_v24, 7  ;;  %v722_v46 = vrot.slane %v720_v17, 1  ;;  %v709_v10 = vor.u32 %v708_v55, %v704_v6  ;;  %v734_v30 = vshll.u32 %v2712_v32, 16 }
 0x156   :  { %753 = vrot.lane.b32.xlu1 %v674_v47, %s2286_s10  ;;  %v575_v39 = vrot.slane %v573_v28, 7  ;;  %v697_v37 = vshrl.u32 %v2679_v5, 16  ;;  %v718_v23 = vshrl.u32 %v2683_v7, 16  ;;  %v715_v2 = vrot.slane %v713_v38, 1 }
 0x157   :  { %v585_v12 = vor.u32 %v583_v36, %v582_v34  ;;  %v727_v60 = vshll.u32 %v2705_v25, 16  ;;  %v736_v49 = vrot.slane %v734_v30, 1  ;;  %v1156_v11 = vsel %vm1011_vm8, %v2237_v54, 0 }
 0x158   :  { %v578_v47 = vor.u32 %v576_v40, %v575_v39  ;;  %v702_v56 = vor.u32 %v701_v45, %v697_v37  ;;  %v723_v57 = vor.u32 %v722_v46, %v718_v23  ;;  %v711_v35 = vshrl.u32 %v2693_v0, 16  ;;  %2153 = vmatpush3.bf16.msra.mxu0 %v1156_v11 }
 0x159   :  { %749 = vrot.lane.b32.xlu0 %v660_v43, %s2286_s10  ;;  %v620_v51 = vsel %vm2580_vm6, 0, %v585_v12  ;;  %v732_v63 = vshrl.u32 %v2712_v32, 16  ;;  %v725_v13 = vshrl.u32 %v2705_v25, 16  ;;  %2154 = vmatprep.subr.bf16.mxu0 %v2239_v41 }
 0x15a   :  { %757 = vrot.lane.b32.xlu1 %v688_v9, %s2286_s10  ;;  %v2773_v31 = vsel %vm2586_vm7, %v620_v51, 0  ;;  %v619_v53 = vsel %vm2580_vm6, 0, %v578_v47  ;;  %v716_v4 = vor.u32 %v715_v2, %v711_v35  ;;  %v729_v9 = vrot.slane %v727_v60, 1 }
 0x15b   :  { %v909_v62 = vshll.u32 %v2773_v31, 16  ;;  %v2784_v43 = vsel %vm2586_vm7, %v619_v53, 0  ;;  %v737_v27 = vor.u32 %v736_v49, %v732_v63  ;;  %v920_v24 = vrot.slane %v2773_v31, 1 }
 0x15c   :  { %v741_v3 = vshll.u32 %v2784_v43, 16  ;;  %v730_v61 = vor.u32 %v729_v9, %v725_v13  ;;  %2155 = vmatpush3.bf16.msra.mxu0 %v2239_v41  ;;  %v739_v21 = vshrl.u32 %v2784_v43, 16  ;;  %v804_v28 = vrot.slane %v2784_v43, 1  ;;  %v2238_v9 = vld [vmem:[%s3289_s4 + $0x18] sm:$0xff]  }
 0x15d   :  { %755 = vrot.lane.b32.xlu0 %v681_v15, %s2286_s10  ;;  %v911_v14 = vrot.slane %v909_v62, 1  ;;  %v907_v15 = vshrl.u32 %v2773_v31, 16 }
 0x15e   :  { %913 = vrot.lane.b32.xlu1 %v905_v26, %s2286_s10  ;;  %v743_v1 = vrot.slane %v741_v3, 1  ;;  %v2287_v26 = vmov 0  }
 0x15f   :  { %v912_v18 = vor.u32 %v911_v14, %v907_v15  ;;  %v645_v55 = vrot.slane %v2287_v26, 1 }
 0x160   :  { %v744_v17 = vor.u32 %v743_v1, %v739_v21 }
 0x161   :  { %759 = vrot.lane.b32.xlu0 %v695_v44, %s2286_s10 }
 0x162   :  { %763 = vrot.lane.b32.xlu1 %v709_v10, %s2286_s10 }
 0x165   :  { %761 = vrot.lane.b32.xlu0 %v702_v56, %s2286_s10 }
 0x166   :  { %767 = vrot.lane.b32.xlu1 %v723_v57, %s2286_s10 }
 0x169   :  { %765 = vrot.lane.b32.xlu0 %v716_v4, %s2286_s10 }
 0x16a   :  { %771 = vrot.lane.b32.xlu1 %v737_v27, %s2286_s10 }
 0x16d   :  { %769 = vrot.lane.b32.xlu0 %v730_v61, %s2286_s10 }
 0x16e   :  { %915 = vrot.lane.b32.xlu1 %v912_v18, %s2286_s10 }
 0x171   :  { %773 = vrot.lane.b32.xlu0 %v744_v17, %s2286_s10 }
 0x172   :  { %923 = vrot.lane.b32.xlu1 %v920_v24, %s2285_s2 }
 0x175   :  { %833 = vrot.lane.b32.xlu0 %v804_v28, %s2285_s2 }
 0x176   :  { %805 = vrot.lane.b32.xlu1 %v645_v55, %s2285_s2 }
 0x179   :  { %745 = vrot.lane.b32.xlu0 %v645_v55, %s2286_s10 }
 0x1a7   :  { %v810_v33 = vpop.permute.xlu1 %809  ;;  %v808_v34 = vpop.permute.xlu0 %807 }
 0x1ab   :  { %v814_v36 = vpop.permute.xlu1 %813  ;;  %v812_v6 = vpop.permute.xlu0 %811 }
 0x1af   :  { %v816_v38 = vpop.permute.xlu1 %815  ;;  %v818_v39 = vpop.permute.xlu0 %817 }
 0x1b3   :  { %v922_v40 = vpop.permute.xlu1 %921 }
 0x1b7   :  { %v820_v44 = vpop.permute.xlu0 %819  ;;  %v824_v45 = vpop.permute.xlu1 %823 }
 0x1bb   :  { %v822_v46 = vpop.permute.xlu0 %821  ;;  %v828_v12 = vpop.permute.xlu1 %827 }
 0x1bf   :  { %v826_v10 = vpop.permute.xlu0 %825 }
 0x1c0   :  { %v2810_v30 = vpop.permute.xlu1 %829 }
 0x1c3   :  { %v832_v47 = vpop.permute.xlu0 %831 }
 0x1c4   :  { %v752_v37 = vpop.permute.xlu1 %751 }
 0x1c5   :  { %v842_v53 = vsel %vm243_vm1, %v2615_v50, %v752_v37 }
 0x1c6   :  { %v2822_v60 = vsel %vm865_vm9, %v842_v53, %v812_v6 }
 0x1c7   :  { %v748_v23 = vpop.permute.xlu0 %747 }
 0x1c8   :  { %v754_v51 = vpop.permute.xlu1 %753  ;;  %v838_v56 = vsel %vm243_vm1, %v2603_v48, %v748_v23 }
 0x1c9   :  { %v844_v54 = vsel %vm243_vm1, %v2607_v42, %v754_v51  ;;  %v2827_v50 = vsel %vm865_vm9, %v838_v56, %v808_v34 }
 0x1ca   :  { %v2819_v57 = vsel %vm865_vm9, %v844_v54, %v814_v36 }
 0x1cb   :  { %v750_v2 = vpop.permute.xlu0 %749  ;;  %v1989_v42 = vcombine.low %v2822_v60, %v2819_v57 }
 0x1cc   :  { %v840_v49 = vsel %vm243_vm1, %v2594_v16, %v750_v2  ;;  %v758_v62 = vpop.permute.xlu1 %757  ;;  %v1277_v16 = vsel %vm1011_vm8, %v2749_v8, 0 }
 0x1cd   :  { %v871_v48 = vsel %vm865_vm9, %v840_v49, %v810_v33  ;;  %v848_v11 = vsel %vm243_vm1, %v2640_v20, %v758_v62 }
 0x1ce   :  { %v1988_v35 = vcombine.low %v2827_v50, %v871_v48  ;;  %v2836_v63 = vsel %vm865_vm9, %v848_v11, %v818_v39  ;;  %v1581_v11 = vld [vmem:[%s3292_s7] sm:$0xf] }
 0x1cf   :  { %v756_v4 = vpop.permute.xlu0 %755  ;;  %2217 = vmatprep.subr.msk.bf16.mxu0 %vm1011_vm8, %v1581_v11 }
 0x1d0   :  { %v846_v3 = vsel %vm243_vm1, %v2623_v52, %v756_v4  ;;  %2136 = vmatprep.mubr.msk.bf16.mxu1 %vm986_vm10, %v1988_v35  ;;  %v914_v27 = vpop.permute.xlu1 %913  ;;  %v1607_v35 = vsel %vm1011_vm8, %v1581_v11, 0 }
 0x1d1   :  { %v877_v20 = vsel %vm865_vm9, %v846_v3, %v816_v38  ;;  %2137 = vmatmul.mubr.msk.bf16.vlgmr.msra.gmra.mxu1 %vm986_vm10, %v1989_v42  ;;  %v926_v14 = vsel %vm243_vm1, %v2649_v19, %v914_v27 }
 0x1d2   :  { %v1990_v13 = vcombine.low %v877_v20, %v2836_v63  ;;  %2173 = vmatpush3.bf16.msra.mxu1 %v1277_v16  ;;  %v2852_v8 = vsel %vm865_vm9, %v926_v14, %v922_v40 }
 0x1d3   :  { %v760_v41 = vpop.permute.xlu0 %759  ;;  %2174 = vmatprep.subr.bf16.mxu1 %v2238_v9 }
 0x1d4   :  { %v850_v52 = vsel %vm243_vm1, %v2664_v58, %v760_v41  ;;  %2140 = vmatprep.mubr.msk.bf16.mxu1 %vm986_vm10, %v1990_v13  ;;  %v764_v15 = vpop.permute.xlu1 %763 }
 0x1d5   :  { %v881_v61 = vsel %vm865_vm9, %v850_v52, %v820_v44  ;;  %v854_v1 = vsel %vm243_vm1, %v2668_v59, %v764_v15 }
 0x1d6   :  { %v1991_v19 = vcombine.low %v881_v61, %v2852_v8  ;;  %2175 = vmatpush3.bf16.msra.mxu1 %v2238_v9  ;;  %v885_v18 = vsel %vm865_vm9, %v854_v1, %v824_v45  ;;  %v2009_v56 = vcombine.low %v2836_v63, %v881_v61 }
 0x1d7   :  { %v762_v21 = vpop.permute.xlu0 %761 }
 0x1d8   :  { %v852_v17 = vsel %vm243_vm1, %v2679_v5, %v762_v21  ;;  %v768_v24 = vpop.permute.xlu1 %767 }
 0x1d9   :  { %v883_v58 = vsel %vm865_vm9, %v852_v17, %v822_v46  ;;  %2141 = vmatmul.mubr.msk.bf16.gmra.mxu1 %vm986_vm10, %v1991_v19  ;;  %v858_v26 = vsel %vm243_vm1, %v2683_v7, %v768_v24 }
 0x1da   :  { %v1992_v55 = vcombine.low %v883_v58, %v885_v18  ;;  %v889_v59 = vsel %vm865_vm9, %v858_v26, %v828_v12 }
 0x1db   :  { %v766_v28 = vpop.permute.xlu0 %765 }
 0x1dc   :  { %v856_v33 = vsel %vm243_vm1, %v2693_v0, %v766_v28  ;;  %2144 = vmatprep.mubr.msk.bf16.mxu1 %vm986_vm10, %v1992_v55  ;;  %v772_v34 = vpop.permute.xlu1 %771 }
 0x1dd   :  { %v887_v5 = vsel %vm865_vm9, %v856_v33, %v826_v10  ;;  %v862_v36 = vsel %vm243_vm1, %v2712_v32, %v772_v34 }
 0x1de   :  { %v1993_v6 = vcombine.low %v887_v5, %v889_v59  ;;  %v893_v38 = vsel %vm865_vm9, %v862_v36, %v832_v47  ;;  %v2011_v49 = vcombine.low %v885_v18, %v887_v5 }
 0x1df   :  { %v770_v39 = vpop.permute.xlu0 %769 }
 0x1e0   :  { %v860_v7 = vsel %vm243_vm1, %v2705_v25, %v770_v39  ;;  %v916_v40 = vpop.permute.xlu1 %915 }
 0x1e1   :  { %v891_v44 = vsel %vm865_vm9, %v860_v7, %v2810_v30  ;;  %2145 = vmatmul.mubr.msk.bf16.gmra.mxu1 %vm986_vm10, %v1993_v6  ;;  %v928_v32 = vsel %vm243_vm1, %v2773_v31, %v916_v40  ;;  %v2007_v30 = vcombine.low %v871_v48, %v2822_v60 }
 0x1e2   :  { %v1994_v0 = vcombine.low %v891_v44, %v893_v38 }
 0x1e3   :  { %v774_v45 = vpop.permute.xlu0 %773 }
 0x1e4   :  { %2148 = vmatprep.mubr.msk.bf16.mxu1 %vm986_vm10, %v1994_v0  ;;  %v924_v46 = vpop.permute.xlu1 %923  ;;  %v864_v10 = vsel %vm243_vm1, %v2784_v43, %v774_v45  ;;  %v2008_v43 = vcombine.low %v2819_v57, %v877_v20  ;;  %v2012_v57 = vcombine.low %v889_v59, %v891_v44 }
 0x1e5   :  { %v932_v12 = vsel %vm865_vm9, %v928_v32, %v924_v46 }
 0x1e7   :  { %v834_v25 = vpop.permute.xlu0 %833 }
 0x1e8   :  { %v895_v47 = vsel %vm865_vm9, %v864_v10, %v834_v25  ;;  %v806_v23 = vpop.permute.xlu1 %805 }
 0x1e9   :  { %v1995_v37 = vcombine.low %v895_v47, %v932_v12  ;;  %v2013_v62 = vcombine.low %v893_v38, %v895_v47 }
 0x1eb   :  { %2149 = vmatmul.mubr.msk.bf16.gmra.mxu1 %vm986_vm10, %v1995_v37  ;;  %v746_v51 = vpop.permute.xlu0 %745 }
 0x1ec   :  { %v836_v53 = vsel %vm243_vm1, 0, %v746_v51  ;;  %2176 = vmatprep.mubr.msk.bf16.mxu1 %vm986_vm10, %v2007_v30 }
 0x1ed   :  { %v867_v31 = vsel %vm865_vm9, %v836_v53, %v806_v23 }
 0x1ee   :  { %v2006_v54 = vcombine.low %v867_v31, %v2827_v50  ;;  %v2010_v2 = vcombine.low %v867_v31, %v883_v58  ;;  %v2027_v60 = vcombine.low %v2852_v8, %v867_v31  ;;  %v2028_v50 = vcombine.low %v932_v12, %v867_v31 }
 0x1f0   :  { %2156 = vmatprep.mubr.msk.bf16.mxu0 %vm986_vm10, %v2006_v54 }
 0x1f1   :  { %2157 = vmatmul.mubr.msk.bf16.vlgmr.msra.gmra.mxu0 %vm986_vm10, %v2007_v30 }
 0x1f2   :  { %2160 = vmatprep.mubr.msk.bf16.mxu0 %vm986_vm10, %v2008_v43  ;;  %2193 = vmatpush3.bf16.msra.mxu0 %v1607_v35 }
 0x1f3   :  { %2177 = vmatmul.mubr.msk.bf16.vlgmr.msra.gmra.mxu1 %vm986_vm10, %v2008_v43 }
 0x1f4   :  { %2180 = vmatprep.mubr.msk.bf16.mxu1 %vm986_vm10, %v2009_v56 }
 0x1f9   :  { %2161 = vmatmul.mubr.msk.bf16.gmra.mxu0 %vm986_vm10, %v2009_v56 }
 0x1fa   :  { %2164 = vmatprep.mubr.msk.bf16.mxu0 %vm986_vm10, %v2010_v2 }
 0x1fb   :  { %2181 = vmatmul.mubr.msk.bf16.gmra.mxu1 %vm986_vm10, %v2027_v60 }
 0x1fc   :  { %2184 = vmatprep.mubr.msk.bf16.mxu1 %vm986_vm10, %v2011_v49 }
 0x201   :  { %2165 = vmatmul.mubr.msk.bf16.gmra.mxu0 %vm986_vm10, %v2011_v49 }
 0x202   :  { %2168 = vmatprep.mubr.msk.bf16.mxu0 %vm986_vm10, %v2012_v57 }
 0x203   :  { %2185 = vmatmul.mubr.msk.bf16.gmra.mxu1 %vm986_vm10, %v2012_v57 }
 0x204   :  { %2188 = vmatprep.mubr.msk.bf16.mxu1 %vm986_vm10, %v2013_v62 }
 0x209   :  { %2169 = vmatmul.mubr.msk.bf16.gmra.mxu0 %vm986_vm10, %v2013_v62 }
 0x20b   :  { %2189 = vmatmul.mubr.msk.bf16.gmra.mxu1 %vm986_vm10, %v2028_v50 }
 0x291   :  { %v2138_v42 = vpop.f32.mrf.mxu1 }
 0x293   :  { %v1049_v48 = vpop.f32.mrf.mxu1 }
 0x295   :  { %v2139_v63 = vpop.f32.mrf.mxu1 }
 0x297   :  { %v1052_v4 = vpop.f32.mrf.mxu1 }
 0x299   :  { %v2142_v16 = vpop.f32.mrf.mxu1 }
 0x29b   :  { %v1065_v9 = vpop.f32.mrf.mxu1 }
 0x29d   :  { %v2143_v3 = vpop.f32.mrf.mxu1 }
 0x29f   :  { %v1068_v27 = vpop.f32.mrf.mxu1 }
 0x2a1   :  { %v2917_v20 = vpop.f32.mrf.mxu1 }
 0x2a3   :  { %v2919_v14 = vpop.f32.mrf.mxu1 }
 0x2a5   :  { %v2921_v13 = vpop.f32.mrf.mxu1 }
 0x2a7   :  { %v2923_v8 = vpop.f32.mrf.mxu1 }
 0x2ab   :  { %v2925_v41 = vpop.f32.mrf.mxu1 }
 0x2ad   :  { %v2927_v52 = vpop.f32.mrf.mxu1 }
 0x2af   :  { %v2929_v15 = vpop.f32.mrf.mxu1 }
 0x2b1   :  { %v2931_v61 = vpop.f32.mrf.mxu1  ;;  %v2158_v1 = vpop.f32.mrf.mxu0 }
 0x2b2   :  { %v1201_v19 = vadd.f32 %v2158_v1, %v2138_v42 }
 0x2b3   :  { %v1192_v18 = vpop.f32.mrf.mxu0  ;;  %v2178_v21 = vpop.f32.mrf.mxu1 }
 0x2b4   :  { %v1193_v17 = vadd.f32 %v1192_v18, %v1049_v48  ;;  %v2935_v59 = vadd.f32 %v2178_v21, %v1201_v19 }
 0x2b5   :  { %v2159_v24 = vpop.f32.mrf.mxu0  ;;  %v1313_v58 = vpop.f32.mrf.mxu1 }
 0x2b6   :  { %v1204_v26 = vadd.f32 %v2159_v24, %v2139_v63  ;;  %v2933_v55 = vadd.f32 %v1313_v58, %v1193_v17  ;;  %v1431_v7 = vmul.f32 %v2935_v59, %v2935_v59  ;;  %v1395_v10 = vsel %vm243_vm1, %v2935_v59, 0.0 }
 0x2b7   :  { %v1195_v28 = vpop.f32.mrf.mxu0  ;;  %v2179_v33 = vpop.f32.mrf.mxu1 }
 0x2b8   :  { %v1196_v34 = vadd.f32 %v1195_v28, %v1052_v4  ;;  %v1429_v6 = vmul.f32 %v2933_v55, %v2933_v55  ;;  %v2939_v38 = vadd.f32 %v2179_v33, %v1204_v26  ;;  %v1392_v45 = vsel %vm243_vm1, %v2933_v55, 0.0 }
 0x2b9   :  { %v2162_v5 = vpop.f32.mrf.mxu0  ;;  %v1316_v36 = vpop.f32.mrf.mxu1  ;;  %v1448_v49 = vsel %vm243_vm1, %v1431_v7, 0.0 }
 0x2ba   :  { %v2941_v39 = vadd.f32 %v1316_v36, %v1196_v34  ;;  %v1217_v40 = vadd.f32 %v2162_v5, %v2142_v16  ;;  %v1445_v30 = vsel %vm243_vm1, %v1429_v6, 0.0  ;;  %v1432_v23 = vmul.f32 %v2939_v38, %v2939_v38 }
 0x2bb   :  { %v1208_v44 = vpop.f32.mrf.mxu0  ;;  %v2182_v0 = vpop.f32.mrf.mxu1  ;;  %v1397_v57 = vsel %vm243_vm1, %v2939_v38, 0.0 }
 0x2bc   :  { %v1393_v46 = vsel %vm243_vm1, %v2941_v39, 0.0  ;;  %v1430_v32 = vmul.f32 %v2941_v39, %v2941_v39  ;;  %v1209_v12 = vadd.f32 %v1208_v44, %v1065_v9  ;;  %v2957_v43 = vadd.f32 %v2182_v0, %v1217_v40 }
 0x2bd   :  { %v1394_v25 = vadd.f32 %v1393_v46, %v1392_v45  ;;  %v2163_v47 = vpop.f32.mrf.mxu0  ;;  %v1329_v37 = vpop.f32.mrf.mxu1  ;;  %v1450_v63 = vsel %vm243_vm1, %v1432_v23, 0.0 }
 0x2be   :  { %v1446_v51 = vsel %vm243_vm1, %v1430_v32, 0.0  ;;  %v1220_v53 = vadd.f32 %v2163_v47, %v2143_v3  ;;  %v2959_v56 = vadd.f32 %v1329_v37, %v1209_v12  ;;  %v1435_v3 = vmul.f32 %v2957_v43, %v2957_v43 }
 0x2bf   :  { %v1396_v31 = vadd.f32 %v1395_v10, %v1394_v25  ;;  %v1447_v54 = vadd.f32 %v1446_v51, %v1445_v30  ;;  %v1211_v2 = vpop.f32.mrf.mxu0  ;;  %v2183_v60 = vpop.f32.mrf.mxu1  ;;  %v1403_v36 = vsel %vm243_vm1, %v2957_v43, 0.0 }
 0x2c0   :  { %v1212_v62 = vadd.f32 %v1211_v2, %v1068_v27  ;;  %v1433_v48 = vmul.f32 %v2959_v56, %v2959_v56  ;;  %v1399_v4 = vsel %vm243_vm1, %v2959_v56, 0.0  ;;  %v2969_v16 = vadd.f32 %v2183_v60, %v1220_v53 }
 0x2c1   :  { %v1449_v50 = vadd.f32 %v1448_v49, %v1447_v54  ;;  %v1398_v42 = vadd.f32 %v1397_v57, %v1396_v31  ;;  %v2166_v11 = vpop.f32.mrf.mxu0  ;;  %v1332_v35 = vpop.f32.mrf.mxu1  ;;  %v1456_v40 = vsel %vm243_vm1, %v1435_v3, 0.0 }
 0x2c2   :  { %v2971_v9 = vadd.f32 %v1332_v35, %v1212_v62  ;;  %v1233_v19 = vadd.f32 %v2166_v11, %v2917_v20  ;;  %v1452_v17 = vsel %vm243_vm1, %v1433_v48, 0.0  ;;  %v1436_v20 = vmul.f32 %v2969_v16, %v2969_v16 }
 0x2c3   :  { %v1400_v27 = vadd.f32 %v1399_v4, %v1398_v42  ;;  %v1451_v1 = vadd.f32 %v1450_v63, %v1449_v50  ;;  %v1224_v18 = vpop.f32.mrf.mxu0  ;;  %v2186_v21 = vpop.f32.mrf.mxu1  ;;  %v1405_v32 = vsel %vm243_vm1, %v2969_v16, 0.0 }
 0x2c4   :  { %v1401_v24 = vsel %vm243_vm1, %v2971_v9, 0.0  ;;  %v1434_v58 = vmul.f32 %v2971_v9, %v2971_v9  ;;  %v1225_v26 = vadd.f32 %v1224_v18, %v2919_v14  ;;  %v2993_v12 = vadd.f32 %v2186_v21, %v1233_v19 }
 0x2c5   :  { %v1453_v28 = vadd.f32 %v1452_v17, %v1451_v1  ;;  %v1402_v33 = vadd.f32 %v1401_v24, %v1400_v27  ;;  %v2167_v34 = vpop.f32.mrf.mxu0  ;;  %v1345_v5 = vpop.f32.mrf.mxu1  ;;  %v1458_v51 = vsel %vm243_vm1, %v1436_v20, 0.0 }
 0x2c6   :  { %v1454_v6 = vsel %vm243_vm1, %v1434_v58, 0.0  ;;  %v2987_v7 = vadd.f32 %v1345_v5, %v1225_v26  ;;  %v1236_v14 = vadd.f32 %v2167_v34, %v2921_v13  ;;  %v1411_v4 = vsel %vm243_vm1, %v2993_v12, 0.0 }
 0x2c7   :  { %v1404_v44 = vadd.f32 %v1403_v36, %v1402_v33  ;;  %v1455_v0 = vadd.f32 %v1454_v6, %v1453_v28  ;;  %v1227_v45 = vpop.f32.mrf.mxu0  ;;  %v2187_v46 = vpop.f32.mrf.mxu1 }
 0x2c8   :  { %v1437_v10 = vmul.f32 %v2987_v7, %v2987_v7  ;;  %v1228_v25 = vadd.f32 %v1227_v45, %v2923_v8  ;;  %v1407_v13 = vsel %vm243_vm1, %v2987_v7, 0.0  ;;  %v3001_v54 = vadd.f32 %v2187_v46, %v1236_v14 }
 0x2c9   :  { %v1457_v47 = vadd.f32 %v1456_v40, %v1455_v0  ;;  %v1406_v37 = vadd.f32 %v1405_v32, %v1404_v44  ;;  %v2170_v30 = vpop.f32.mrf.mxu0  ;;  %v1348_v23 = vpop.f32.mrf.mxu1  ;;  %v1439_v8 = vmul.f32 %v2993_v12, %v2993_v12 }
 0x2ca   :  { %v3003_v2 = vadd.f32 %v1348_v23, %v1228_v25  ;;  %v1460_v57 = vsel %vm243_vm1, %v1437_v10, 0.0  ;;  %v1249_v42 = vadd.f32 %v2170_v30, %v2925_v41  ;;  %v1440_v27 = vmul.f32 %v3001_v54, %v3001_v54 }
 0x2cb   :  { %v1408_v53 = vadd.f32 %v1407_v13, %v1406_v37  ;;  %v1459_v31 = vadd.f32 %v1458_v51, %v1457_v47  ;;  %v1240_v60 = vpop.f32.mrf.mxu0  ;;  %v2190_v49 = vpop.f32.mrf.mxu1  ;;  %v1464_v58 = vsel %vm243_vm1, %v1439_v8, 0.0  ;;  %v1413_v26 = vsel %vm243_vm1, %v3001_v54, 0.0 }
 0x2cc   :  { %v1241_v62 = vadd.f32 %v1240_v60, %v2927_v52  ;;  %v1409_v48 = vsel %vm243_vm1, %v3003_v2, 0.0  ;;  %v1438_v11 = vmul.f32 %v3003_v2, %v3003_v2  ;;  %v3026_v28 = vadd.f32 %v2190_v49, %v1249_v42 }
 0x2cd   :  { %v1461_v50 = vadd.f32 %v1460_v57, %v1459_v31  ;;  %v2171_v35 = vpop.f32.mrf.mxu0  ;;  %v1361_v63 = vpop.f32.mrf.mxu1  ;;  %v1410_v3 = vadd.f32 %v1409_v48, %v1408_v53  ;;  %v1466_v20 = vsel %vm243_vm1, %v1440_v27, 0.0 }
 0x2ce   :  { %v1462_v52 = vsel %vm243_vm1, %v1438_v11, 0.0  ;;  %v1252_v1 = vadd.f32 %v2171_v35, %v2929_v15  ;;  %v3020_v41 = vadd.f32 %v1361_v63, %v1241_v62  ;;  %v1443_v45 = vmul.f32 %v3026_v28, %v3026_v28 }
 0x2cf   :  { %v1243_v19 = vpop.f32.mrf.mxu0  ;;  %v2191_v18 = vpop.f32.mrf.mxu1  ;;  %v1412_v21 = vadd.f32 %v1411_v4, %v1410_v3  ;;  %v1463_v17 = vadd.f32 %v1462_v52, %v1461_v50  ;;  %v1419_v47 = vsel %vm243_vm1, %v3026_v28, 0.0 }
 0x2d0   :  { %v1244_v24 = vadd.f32 %v1243_v19, %v2931_v61  ;;  %v1441_v33 = vmul.f32 %v3020_v41, %v3020_v41  ;;  %v1415_v6 = vsel %vm243_vm1, %v3020_v41, 0.0  ;;  %v3033_v61 = vadd.f32 %v2191_v18, %v1252_v1 }
 0x2d1   :  { %v1364_v34 = vpop.f32.mrf.mxu1  ;;  %v1465_v15 = vadd.f32 %v1464_v58, %v1463_v17  ;;  %v1414_v5 = vadd.f32 %v1413_v26, %v1412_v21  ;;  %v1472_v51 = vsel %vm243_vm1, %v1443_v45, 0.0 }
 0x2d2   :  { %v1389_v36 = vadd.f32 %v1364_v34, %v1244_v24  ;;  %v1468_v46 = vsel %vm243_vm1, %v1441_v33, 0.0  ;;  %v1444_v37 = vmul.f32 %v3033_v61, %v3033_v61  ;;  %v1421_v13 = vsel %vm243_vm1, %v3033_v61, 0.0  ;;  %v1483_v33 = vld [vmem:[%s3290_s5] sm:$0x1] }
 0x2d3   :  { %v1416_v40 = vadd.f32 %v1415_v6, %v1414_v5  ;;  %v1467_v44 = vadd.f32 %v1466_v20, %v1465_v15  ;;  %v1484_v5 = vld [vmem:[%s3291_s6] sm:$0x1] }
 0x2d4   :  { %v1417_v0 = vsel %vm243_vm1, %v1389_v36, 0.0  ;;  %v1442_v14 = vmul.f32 %v1389_v36, %v1389_v36  ;;  %v1474_v60 = vsel %vm243_vm1, %v1444_v37, 0.0 }
 0x2d5   :  { %v1469_v32 = vadd.f32 %v1468_v46, %v1467_v44  ;;  %v1418_v10 = vadd.f32 %v1417_v0, %v1416_v40 }
 0x2d6   :  { %v1470_v25 = vsel %vm243_vm1, %v1442_v14, 0.0 }
 0x2d7   :  { %v1420_v30 = vadd.f32 %v1419_v47, %v1418_v10  ;;  %v1471_v23 = vadd.f32 %v1470_v25, %v1469_v32 }
 0x2d9   :  { %v1422_v53 = vadd.f32 %v1421_v13, %v1420_v30  ;;  %v1473_v31 = vadd.f32 %v1472_v51, %v1471_v23 }
 0x2db   :  { %v1423_v49 = vrot.slane %v1422_v53, 4  ;;  %v1475_v8 = vadd.f32 %v1474_v60, %v1473_v31 }
 0x2dd   :  { %v1424_v57 = vadd.f32 %v1423_v49, %v1422_v53  ;;  %v1476_v62 = vrot.slane %v1475_v8, 4 }
 0x2df   :  { %v1425_v50 = vrot.slane %v1424_v57, 2  ;;  %v1477_v42 = vadd.f32 %v1476_v62, %v1475_v8 }
 0x2e1   :  { %v1426_v48 = vadd.f32 %v1425_v50, %v1424_v57  ;;  %v1478_v11 = vrot.slane %v1477_v42, 2 }
 0x2e3   :  { %v1427_v35 = vrot.slane %v1426_v48, 1  ;;  %v1479_v63 = vadd.f32 %v1478_v11, %v1477_v42 }
 0x2e5   :  { %v1480_v4 = vrot.slane %v1479_v63, 1  ;;  %v1428_v3 = vadd.f32 %v1427_v35, %v1426_v48 }
 0x2e7   :  { %v1481_v27 = vadd.f32 %v1480_v4, %v1479_v63 }
 0x2e9   :  { %v1482_v52 = vsel %vm334_vm2, %v1428_v3, %v1481_v27 }
 0x2ea   :  { %v1485_v1 = vmul.f32 0.0078125, %v1482_v52 }
 0x2ec   :  { %v1486_v19 = vmul.f32 %v1485_v1, %v1485_v1 }
 0x2ee   :  { %v1488_v18 = vrot.slane %v1486_v19, 7 }
 0x2f0   :  { %v1490_v21 = vsub.f32 %v1485_v1, %v1488_v18 }
 0x2f2   :  { %v1491_v17 = vadd.f32 1e-05, %v1490_v21 }
 0x2f4   :  { %2250 = vrsqrt.f32 %v1491_v17 }
 0x301   :  { %v2251_v24 = vpop.eup %2250 }
 0x302   :  { %v1500_v58 = vrot.slane %v2251_v24, %v2516_v22 }
 0x304   :  { %v1501_v26 = vcombine.high %v1500_v58, %v1500_v58 }
 0x306   :  { %v1508_v34 = vrot.slane %v1501_v26, %v2516_v22 }
 0x308   :  { %v1510_v15 = vmul.f32 %v1508_v34, %v1483_v33 }
 0x30a   :  { %v1511_v20 = vmul.f32 %v1510_v15, %v1485_v1  ;;  %v1517_v6 = vrot.slane %v1510_v15, %v2523_v29 }
 0x30c   :  { %v1512_v40 = vsub.f32 %v1484_v5, %v1511_v20  ;;  %v1519_v0 = vmul.f32 %v1517_v6, %v2933_v55  ;;  %v1520_v14 = vmul.f32 %v1517_v6, %v2941_v39  ;;  %v1521_v45 = vmul.f32 %v1517_v6, %v2935_v59 }
 0x30d   :  { %v1532_v46 = vmul.f32 %v1517_v6, %v1389_v36  ;;  %v1522_v32 = vmul.f32 %v1517_v6, %v2939_v38  ;;  %v1523_v10 = vmul.f32 %v1517_v6, %v2959_v56  ;;  %v1524_v25 = vmul.f32 %v1517_v6, %v2971_v9 }
 0x30e   :  { %v1539_v44 = vrot.slane %v1512_v40, %v2523_v29  ;;  %v1525_v39 = vmul.f32 %v1517_v6, %v2957_v43  ;;  %v1526_v38 = vmul.f32 %v1517_v6, %v2969_v16  ;;  %v1527_v9 = vmul.f32 %v1517_v6, %v2987_v7 }
 0x30f   :  { %v1528_v8 = vmul.f32 %v1517_v6, %v3003_v2  ;;  %v1531_v57 = vmul.f32 %v1517_v6, %v3020_v41  ;;  %v1529_v27 = vmul.f32 %v1517_v6, %v2993_v12  ;;  %v1530_v52 = vmul.f32 %v1517_v6, %v3001_v54 }
 0x310   :  { %v1541_v47 = vadd.f32 %v1539_v44, %v1519_v0  ;;  %v1542_v37 = vadd.f32 %v1539_v44, %v1520_v14  ;;  %v1543_v30 = vadd.f32 %v1539_v44, %v1521_v45  ;;  %v1554_v23 = vadd.f32 %v1539_v44, %v1532_v46 }
 0x311   :  { %v1544_v51 = vadd.f32 %v1539_v44, %v1522_v32  ;;  %v1545_v13 = vadd.f32 %v1539_v44, %v1523_v10  ;;  %v1546_v53 = vadd.f32 %v1539_v44, %v1524_v25  ;;  %v1547_v42 = vadd.f32 %v1539_v44, %v1525_v39 }
 0x312   :  { %v1557_v31 = vmax.f32 %v1541_v47, 0.0  ;;  %v1558_v55 = vmax.f32 %v1542_v37, 0.0  ;;  %v1559_v60 = vmax.f32 %v1543_v30, 0.0  ;;  %v1570_v62 = vmax.f32 %v1554_v23, 0.0 }
 0x313   :  { %v1560_v59 = vmax.f32 %v1544_v51, 0.0  ;;  %v1561_v36 = vmax.f32 %v1545_v13, 0.0  ;;  %v1562_v49 = vmax.f32 %v1546_v53, 0.0  ;;  %v1548_v48 = vadd.f32 %v1539_v44, %v1526_v38 }
 0x314   :  { %v1573_v56 = vpack.c.bf16 %v1558_v55, %v1557_v31  ;;  %v1549_v43 = vadd.f32 %v1539_v44, %v1527_v9  ;;  %v1550_v35 = vadd.f32 %v1539_v44, %v1528_v8  ;;  %v1553_v63 = vadd.f32 %v1539_v44, %v1531_v57 }
 0x315   :  { %v1574_v50 = vpack.c.bf16 %v1560_v59, %v1559_v60  ;;  %v1575_v11 = vpack.c.bf16 %v1562_v49, %v1561_v36  ;;  %v1563_v7 = vmax.f32 %v1547_v42, 0.0  ;;  %v1564_v4 = vmax.f32 %v1548_v48, 0.0 }
 0x316   :  { %2194 = vmatprep.mubr.msk.bf16.mxu0 %vm243_vm1, %v1573_v56  ;;  %v1569_v16 = vmax.f32 %v1553_v63, 0.0  ;;  %v1565_v2 = vmax.f32 %v1549_v43, 0.0  ;;  %v1566_v3 = vmax.f32 %v1550_v35, 0.0  ;;  %v1551_v19 = vadd.f32 %v1539_v44, %v1529_v27 }
 0x317   :  { %2195 = vmatmul.mubr.msk.bf16.vlgmr.msra.gmra.mxu0 %vm243_vm1, %v1574_v50  ;;  %v1576_v1 = vpack.c.bf16 %v1564_v4, %v1563_v7  ;;  %v1552_v18 = vadd.f32 %v1539_v44, %v1530_v52  ;;  %v1533_v58 = vmul.f32 %v1517_v6, %v3026_v28  ;;  %v1534_v26 = vmul.f32 %v1517_v6, %v3033_v61 }
 0x318   :  { %2198 = vmatprep.mubr.msk.bf16.mxu0 %vm243_vm1, %v1575_v11  ;;  %v1579_v41 = vpack.c.bf16 %v1570_v62, %v1569_v16  ;;  %v1577_v21 = vpack.c.bf16 %v1566_v3, %v1565_v2  ;;  %v1567_v17 = vmax.f32 %v1551_v19, 0.0 }
 0x319   :  { %v1568_v24 = vmax.f32 %v1552_v18, 0.0  ;;  %v1555_v34 = vadd.f32 %v1539_v44, %v1533_v58  ;;  %v1556_v15 = vadd.f32 %v1539_v44, %v1534_v26 }
 0x31b   :  { %v1578_v33 = vpack.c.bf16 %v1568_v24, %v1567_v17  ;;  %v1571_v12 = vmax.f32 %v1555_v34, 0.0  ;;  %v1572_v54 = vmax.f32 %v1556_v15, 0.0 }
 0x31d   :  { %v1580_v5 = vpack.c.bf16 %v1572_v54, %v1571_v12 }
 0x31f   :  { %2199 = vmatmul.mubr.msk.bf16.gmra.mxu0 %vm243_vm1, %v1576_v1 }
 0x320   :  { %2202 = vmatprep.mubr.msk.bf16.mxu0 %vm243_vm1, %v1577_v21 }
 0x327   :  { %2203 = vmatmul.mubr.msk.bf16.gmra.mxu0 %vm243_vm1, %v1578_v33 }
 0x328   :  { %2206 = vmatprep.mubr.msk.bf16.mxu0 %vm243_vm1, %v1579_v41 }
 0x32f   :  { %2207 = vmatmul.mubr.msk.bf16.gmra.mxu0 %vm243_vm1, %v1580_v5 }
 0x3d7   :  { %v3082_v20 = vpop.f32.mrf.mxu0 }
 0x3d8   :  { %v1745_v6 = vmul.f32 %v3082_v20, %v3082_v20  ;;  %v1709_v10 = vsel %vm121_vm0, %v3082_v20, 0.0 }
 0x3d9   :  { %v3084_v40 = vpop.f32.mrf.mxu0 }
 0x3da   :  { %v1743_v28 = vmul.f32 %v3084_v40, %v3084_v40  ;;  %v1706_v44 = vsel %vm121_vm0, %v3084_v40, 0.0  ;;  %v1762_v13 = vsel %vm121_vm0, %v1745_v6, 0.0 }
 0x3db   :  { %v3086_v0 = vpop.f32.mrf.mxu0 }
 0x3dc   :  { %v1759_v25 = vsel %vm121_vm0, %v1743_v28, 0.0  ;;  %v1746_v47 = vmul.f32 %v3086_v0, %v3086_v0  ;;  %v1711_v53 = vsel %vm121_vm0, %v3086_v0, 0.0 }
 0x3dd   :  { %v3090_v61 = vpop.f32.mrf.mxu0 }
 0x3de   :  { %v1707_v14 = vsel %vm121_vm0, %v3090_v61, 0.0  ;;  %v1744_v45 = vmul.f32 %v3090_v61, %v3090_v61  ;;  %v1764_v59 = vsel %vm121_vm0, %v1746_v47, 0.0 }
 0x3df   :  { %v1708_v46 = vadd.f32 %v1707_v14, %v1706_v44  ;;  %v3100_v32 = vpop.f32.mrf.mxu0 }
 0x3e0   :  { %v1760_v37 = vsel %vm121_vm0, %v1744_v45, 0.0  ;;  %v1749_v9 = vmul.f32 %v3100_v32, %v3100_v32  ;;  %v1717_v11 = vsel %vm121_vm0, %v3100_v32, 0.0 }
 0x3e1   :  { %v1710_v30 = vadd.f32 %v1709_v10, %v1708_v46  ;;  %v1761_v23 = vadd.f32 %v1760_v37, %v1759_v25  ;;  %v3108_v51 = vpop.f32.mrf.mxu0 }
 0x3e2   :  { %v1747_v31 = vmul.f32 %v3108_v51, %v3108_v51  ;;  %v1713_v36 = vsel %vm121_vm0, %v3108_v51, 0.0  ;;  %v1770_v4 = vsel %vm121_vm0, %v1749_v9, 0.0 }
 0x3e3   :  { %v1763_v55 = vadd.f32 %v1762_v13, %v1761_v23  ;;  %v1712_v60 = vadd.f32 %v1711_v53, %v1710_v30  ;;  %v3115_v39 = vpop.f32.mrf.mxu0 }
 0x3e4   :  { %v1766_v8 = vsel %vm121_vm0, %v1747_v31, 0.0  ;;  %v1750_v43 = vmul.f32 %v3115_v39, %v3115_v39  ;;  %v1719_v2 = vsel %vm121_vm0, %v3115_v39, 0.0 }
 0x3e5   :  { %v1714_v49 = vadd.f32 %v1713_v36, %v1712_v60  ;;  %v1765_v38 = vadd.f32 %v1764_v59, %v1763_v55  ;;  %v3120_v56 = vpop.f32.mrf.mxu0 }
 0x3e6   :  { %v1715_v57 = vsel %vm121_vm0, %v3120_v56, 0.0  ;;  %v1748_v62 = vmul.f32 %v3120_v56, %v3120_v56  ;;  %v1772_v1 = vsel %vm121_vm0, %v1750_v43, 0.0 }
 0x3e7   :  { %v1767_v50 = vadd.f32 %v1766_v8, %v1765_v38  ;;  %v1716_v42 = vadd.f32 %v1715_v57, %v1714_v49  ;;  %v3129_v48 = vpop.f32.mrf.mxu0 }
 0x3e8   :  { %v1768_v35 = vsel %vm121_vm0, %v1748_v62, 0.0  ;;  %v1753_v24 = vmul.f32 %v3129_v48, %v3129_v48  ;;  %v1725_v54 = vsel %vm121_vm0, %v3129_v48, 0.0 }
 0x3e9   :  { %v1718_v63 = vadd.f32 %v1717_v11, %v1716_v42  ;;  %v1769_v16 = vadd.f32 %v1768_v35, %v1767_v50  ;;  %v3136_v7 = vpop.f32.mrf.mxu0 }
 0x3ea   :  { %v1751_v3 = vmul.f32 %v3136_v7, %v3136_v7  ;;  %v1721_v19 = vsel %vm121_vm0, %v3136_v7, 0.0  ;;  %v1778_v45 = vsel %vm121_vm0, %v1753_v24, 0.0 }
 0x3eb   :  { %v1771_v41 = vadd.f32 %v1770_v4, %v1769_v16  ;;  %v1720_v27 = vadd.f32 %v1719_v2, %v1718_v63  ;;  %v3143_v52 = vpop.f32.mrf.mxu0 }
 0x3ec   :  { %v1774_v58 = vsel %vm121_vm0, %v1751_v3, 0.0  ;;  %v1754_v5 = vmul.f32 %v3143_v52, %v3143_v52  ;;  %v1727_v46 = vsel %vm121_vm0, %v3143_v52, 0.0 }
 0x3ed   :  { %v1722_v18 = vadd.f32 %v1721_v19, %v1720_v27  ;;  %v1773_v21 = vadd.f32 %v1772_v1, %v1771_v41  ;;  %v3148_v17 = vpop.f32.mrf.mxu0 }
 0x3ee   :  { %v1723_v26 = vsel %vm121_vm0, %v3148_v17, 0.0  ;;  %v1752_v33 = vmul.f32 %v3148_v17, %v3148_v17  ;;  %v1780_v30 = vsel %vm121_vm0, %v1754_v5, 0.0 }
 0x3ef   :  { %v1775_v34 = vadd.f32 %v1774_v58, %v1773_v21  ;;  %v1724_v15 = vadd.f32 %v1723_v26, %v1722_v18  ;;  %v3157_v12 = vpop.f32.mrf.mxu0 }
 0x3f0   :  { %v1776_v28 = vsel %vm121_vm0, %v1752_v33, 0.0  ;;  %v1757_v55 = vmul.f32 %v3157_v12, %v3157_v12  ;;  %v1733_v9 = vsel %vm121_vm0, %v3157_v12, 0.0 }
 0x3f1   :  { %v1726_v6 = vadd.f32 %v1725_v54, %v1724_v15  ;;  %v1777_v44 = vadd.f32 %v1776_v28, %v1775_v34  ;;  %v3164_v14 = vpop.f32.mrf.mxu0 }
 0x3f2   :  { %v1755_v10 = vmul.f32 %v3164_v14, %v3164_v14  ;;  %v1729_v23 = vsel %vm121_vm0, %v3164_v14, 0.0  ;;  %v1786_v42 = vsel %vm121_vm0, %v1757_v55, 0.0 }
 0x3f3   :  { %v1779_v25 = vadd.f32 %v1778_v45, %v1777_v44  ;;  %v1728_v47 = vadd.f32 %v1727_v46, %v1726_v6  ;;  %v3171_v37 = vpop.f32.mrf.mxu0  ;;  %v1797_v46 = vld [vmem:[%s3293_s8] sm:$0x1] }
 0x3f4   :  { %v1782_v60 = vsel %vm121_vm0, %v1755_v10, 0.0  ;;  %v1758_v8 = vmul.f32 %v3171_v37, %v3171_v37  ;;  %v1735_v11 = vsel %vm121_vm0, %v3171_v37, 0.0 }
 0x3f5   :  { %v1730_v13 = vadd.f32 %v1729_v23, %v1728_v47  ;;  %v1781_v53 = vadd.f32 %v1780_v30, %v1779_v25  ;;  %v3176_v31 = vpop.f32.mrf.mxu0  ;;  %v3203_v25 = vld [vmem:[%s3285_s0] sm:$0xff]   ;;  %v3210_v23 = vld [vmem:[%s3285_s0 + $0x8] sm:$0xff]  }
 0x3f6   :  { %v1731_v59 = vsel %vm121_vm0, %v3176_v31, 0.0  ;;  %v1756_v36 = vmul.f32 %v3176_v31, %v3176_v31  ;;  %v1788_v63 = vsel %vm121_vm0, %v1758_v8, 0.0  ;;  %v1871_v47 = vunpack.c.l.bf16 %v3203_v25 }
 0x3f7   :  { %v1783_v49 = vadd.f32 %v1782_v60, %v1781_v53  ;;  %v1732_v38 = vadd.f32 %v1731_v59, %v1730_v13  ;;  %v1872_v30 = vunpack.c.h.bf16 %v3203_v25  ;;  %v1873_v13 = vunpack.c.l.bf16 %v3210_v23 }
 0x3f8   :  { %v1784_v57 = vsel %vm121_vm0, %v1756_v36, 0.0  ;;  %v1874_v53 = vunpack.c.h.bf16 %v3210_v23  ;;  %v3224_v36 = vld [vmem:[%s3285_s0 + $0x18] sm:$0xff]  }
 0x3f9   :  { %v1734_v62 = vadd.f32 %v1733_v9, %v1732_v38  ;;  %v1785_v50 = vadd.f32 %v1784_v57, %v1783_v49  ;;  %v1877_v49 = vunpack.c.l.bf16 %v3224_v36  ;;  %v1878_v38 = vunpack.c.h.bf16 %v3224_v36  ;;  %v2258_v9 = vld [vmem:[%s3285_s0 + $0x20] sm:$0xff]  }
 0x3fa   :  { %v1879_v8 = vunpack.c.l.bf16 %v2258_v9  ;;  %v1880_v57 = vunpack.c.h.bf16 %v2258_v9 }
 0x3fb   :  { %v1736_v43 = vadd.f32 %v1735_v11, %v1734_v62  ;;  %v1787_v35 = vadd.f32 %v1786_v42, %v1785_v50  ;;  %v1798_v62 = vld [vmem:[%s3294_s9] sm:$0x1]  ;;  %v2259_v50 = vld [vmem:[%s3285_s0 + $0x28] sm:$0xff]  }
 0x3fc   :  { %v1881_v42 = vunpack.c.l.bf16 %v2259_v50  ;;  %v1882_v11 = vunpack.c.h.bf16 %v2259_v50 }
 0x3fd   :  { %v1737_v16 = vrot.slane %v1736_v43, 4  ;;  %v1789_v4 = vadd.f32 %v1788_v63, %v1787_v35  ;;  %v2260_v63 = vld [vmem:[%s3285_s0 + $0x30] sm:$0xff]  }
 0x3ff   :  { %v1738_v2 = vadd.f32 %v1737_v16, %v1736_v43  ;;  %v1790_v3 = vrot.slane %v1789_v4, 4  ;;  %v1883_v16 = vunpack.c.l.bf16 %v2260_v63 }
 0x401   :  { %v1739_v41 = vrot.slane %v1738_v2, 2  ;;  %v1791_v27 = vadd.f32 %v1790_v3, %v1789_v4  ;;  %v2261_v4 = vld [vmem:[%s3285_s0 + $0x38] sm:$0xff]  }
 0x402   :  { %v1886_v3 = vunpack.c.h.bf16 %v2261_v4 }
 0x403   :  { %v1740_v1 = vadd.f32 %v1739_v41, %v1738_v2  ;;  %v1792_v19 = vrot.slane %v1791_v27, 2  ;;  %v1885_v2 = vunpack.c.l.bf16 %v2261_v4  ;;  %v1884_v41 = vunpack.c.h.bf16 %v2260_v63 }
 0x405   :  { %v1741_v18 = vrot.slane %v1740_v1, 1  ;;  %v1793_v21 = vadd.f32 %v1792_v19, %v1791_v27 }
 0x407   :  { %v1794_v24 = vrot.slane %v1793_v21, 1  ;;  %v1742_v58 = vadd.f32 %v1741_v18, %v1740_v1 }
 0x409   :  { %v1795_v26 = vadd.f32 %v1794_v24, %v1793_v21 }
 0x40b   :  { %v1796_v33 = vsel %vm334_vm2, %v1742_v58, %v1795_v26 }
 0x40c   :  { %v1799_v34 = vmul.f32 0.0078125, %v1796_v33 }
 0x40e   :  { %v1800_v15 = vmul.f32 %v1799_v34, %v1799_v34 }
 0x410   :  { %v1802_v54 = vrot.slane %v1800_v15, 7 }
 0x412   :  { %v1804_v5 = vsub.f32 %v1799_v34, %v1802_v54 }
 0x414   :  { %v1805_v28 = vadd.f32 1e-05, %v1804_v5 }
 0x416   :  { %2252 = vrsqrt.f32 %v1805_v28 }
 0x423   :  { %v2253_v6 = vpop.eup %2252 }
 0x424   :  { %v1814_v44 = vrot.slane %v2253_v6, %v2516_v22 }
 0x426   :  { %v1815_v45 = vcombine.high %v1814_v44, %v1814_v44 }
 0x428   :  { %v1822_v10 = vrot.slane %v1815_v45, %v2516_v22  ;;  %v3217_v22 = vld [vmem:[%s3285_s0 + $0x10] sm:$0xff]   ;;  %s2288_s0 = smov [#allocation2]  }
 0x429   :  { %v1875_v55 = vunpack.c.l.bf16 %v3217_v22  ;;  %v1876_v60 = vunpack.c.h.bf16 %v3217_v22  ;;  %s1940_s9 = sshll.u32 %s2288_s0, 4  ;;  %s1941_s9 = int_to_ptr.vmem [resolvable:$true] %s1940_s9 }
 0x42a   :  { %v1824_v59 = vmul.f32 %v1822_v10, %v1797_v46  ;;  %s2262_s22 = scalar_lea.vmem %s1941_s9, 2048  ;;  %p2267_p1 = scmp.lt.s32.totalorder %s1941_s9, %s1941_s9 }
 0x42b   :  { %p2263_p0 = scmp.ne.s32.totalorder %s1941_s9, %s2262_s22  ;;  %p2268_p2 = scmp.lt.s32.totalorder %s2262_s22, %s2262_s22 }
 0x42c   :  { %v1825_v43 = vmul.f32 %v1824_v59, %v1799_v34  ;;  %v1831_v35 = vrot.slane %v1824_v59, %v2523_v29 }
 0x42d   :  { %p2269_p3 = por %p2268_p2, %p2267_p1 }
 0x42e   :  { %v1826_v27 = vsub.f32 %v1798_v62, %v1825_v43  ;;  %v1846_v1 = vmul.f32 %v1831_v35, %v3176_v31  ;;  %v1833_v19 = vmul.f32 %v1831_v35, %v3084_v40  ;;  %v1834_v18 = vmul.f32 %v1831_v35, %v3090_v61 }
 0x42f   :  { %v1835_v21 = vmul.f32 %v3082_v20, %v1831_v35  ;;  %v1836_v24 = vmul.f32 %v3086_v0, %v1831_v35  ;;  %v1837_v58 = vmul.f32 %v1831_v35, %v3108_v51  ;;  %v1838_v26 = vmul.f32 %v1831_v35, %v3120_v56  ;;  %p2270_p4 = pnand %p2269_p3, %p2263_p0 }
 0x430   :  { %v1853_v33 = vrot.slane %v1826_v27, %v2523_v29  ;;  %v1839_v34 = vmul.f32 %v3100_v32, %v1831_v35  ;;  %v1840_v15 = vmul.f32 %v3115_v39, %v1831_v35  ;;  %v1841_v31 = vmul.f32 %v1831_v35, %v3136_v7 }
 0x431   :  { %v1842_v40 = vmul.f32 %v1831_v35, %v3148_v17  ;;  %v1843_v61 = vmul.f32 %v3129_v48, %v1831_v35  ;;  %v1844_v20 = vmul.f32 %v3143_v52, %v1831_v35  ;;  %v1845_v0 = vmul.f32 %v1831_v35, %v3164_v14 }
 0x432   :  { %v1868_v54 = vadd.f32 %v1853_v33, %v1846_v1  ;;  %v1847_v51 = vmul.f32 %v3157_v12, %v1831_v35  ;;  %v1848_v56 = vmul.f32 %v3171_v37, %v1831_v35  ;;  %v1855_v29 = vadd.f32 %v1853_v33, %v1833_v19 }
 0x433   :  { %v1856_v5 = vadd.f32 %v1853_v33, %v1834_v18  ;;  %v1857_v32 = vadd.f32 %v1853_v33, %v1835_v21  ;;  %v1858_v28 = vadd.f32 %v1853_v33, %v1836_v24  ;;  %v1859_v39 = vadd.f32 %v1853_v33, %v1837_v58 }
 0x434   :  { %v1900_v6 = vadd.f32 %v1884_v41, %v1868_v54  ;;  %v1860_v7 = vadd.f32 %v1853_v33, %v1838_v26  ;;  %v1861_v44 = vadd.f32 %v1853_v33, %v1839_v34  ;;  %v1862_v17 = vadd.f32 %v1853_v33, %v1840_v15 }
 0x435   :  { %v1863_v45 = vadd.f32 %v1853_v33, %v1841_v31  ;;  %v1864_v48 = vadd.f32 %v1853_v33, %v1842_v40  ;;  %v1865_v46 = vadd.f32 %v1853_v33, %v1843_v61  ;;  %v1866_v52 = vadd.f32 %v1853_v33, %v1844_v20 }
 0x436   :  { %v1916_v10 = vmax.f32 %v1900_v6, 0.0  ;;  %v1867_v14 = vadd.f32 %v1853_v33, %v1845_v0  ;;  %v1869_v23 = vadd.f32 %v1853_v33, %v1847_v51  ;;  %v1870_v22 = vadd.f32 %v1853_v33, %v1848_v56 }
 0x437   :  { %v1887_v12 = vadd.f32 %v1871_v47, %v1855_v29  ;;  %v1888_v37 = vadd.f32 %v1872_v30, %v1856_v5  ;;  %v1889_v59 = vadd.f32 %v1873_v13, %v1857_v32  ;;  %v1890_v36 = vadd.f32 %v1874_v53, %v1858_v28 }
 0x438   :  { %1932 = vst.msk [vmem:[#allocation2 + $0x68] sm:$0xff] %vm121_vm0, %v1916_v10  ;;  %v1891_v9 = vadd.f32 %v1875_v55, %v1859_v39  ;;  %v1892_v62 = vadd.f32 %v1876_v60, %v1860_v7  ;;  %v1893_v50 = vadd.f32 %v1877_v49, %v1861_v44  ;;  %v1894_v43 = vadd.f32 %v1878_v38, %v1862_v17 }
 0x439   :  { %v1895_v35 = vadd.f32 %v1879_v8, %v1863_v45  ;;  %v1896_v63 = vadd.f32 %v1880_v57, %v1864_v48  ;;  %v1897_v4 = vadd.f32 %v1881_v42, %v1865_v46  ;;  %v1898_v41 = vadd.f32 %v1882_v11, %v1866_v52 }
 0x43a   :  { %v1899_v27 = vadd.f32 %v1883_v16, %v1867_v14  ;;  %v1901_v1 = vadd.f32 %v1885_v2, %v1869_v23  ;;  %v1902_v19 = vadd.f32 %v1886_v3, %v1870_v22  ;;  %v1903_v18 = vmax.f32 %v1887_v12, 0.0 }
 0x43b   :  { %v1904_v47 = vmax.f32 %v1888_v37, 0.0  ;;  %v1905_v21 = vmax.f32 %v1889_v59, 0.0  ;;  %v1906_v25 = vmax.f32 %v1890_v36, 0.0  ;;  %v1907_v30 = vmax.f32 %v1891_v9, 0.0 }
 0x43c   :  { %v1908_v13 = vmax.f32 %v1892_v62, 0.0  ;;  %v1909_v53 = vmax.f32 %v1893_v50, 0.0  ;;  %v1910_v55 = vmax.f32 %v1894_v43, 0.0  ;;  %v1911_v60 = vmax.f32 %v1895_v35, 0.0  ;;  %1919 = vst.msk [vmem:[#allocation2] sm:$0xff] %vm121_vm0, %v1903_v18 }
 0x43d   :  { %v1912_v49 = vmax.f32 %v1896_v63, 0.0  ;;  %v1913_v38 = vmax.f32 %v1897_v4, 0.0  ;;  %v1914_v8 = vmax.f32 %v1898_v41, 0.0  ;;  %v1915_v57 = vmax.f32 %v1899_v27, 0.0  ;;  %1920 = vst.msk [vmem:[#allocation2 + $0x8] sm:$0xff] %vm121_vm0, %v1904_v47  ;;  %1921 = vst.msk [vmem:[#allocation2 + $0x10] sm:$0xff] %vm121_vm0, %v1905_v21 }
 0x43e   :  { %1922 = vst.msk [vmem:[#allocation2 + $0x18] sm:$0xff] %vm121_vm0, %v1906_v25  ;;  %1923 = vst.msk [vmem:[#allocation2 + $0x20] sm:$0xff] %vm121_vm0, %v1907_v30  ;;  %v1917_v42 = vmax.f32 %v1901_v1, 0.0  ;;  %v1918_v11 = vmax.f32 %v1902_v19, 0.0 }
 0x43f   :  { %1924 = vst.msk [vmem:[#allocation2 + $0x28] sm:$0xff] %vm121_vm0, %v1908_v13  ;;  %1925 = vst.msk [vmem:[#allocation2 + $0x30] sm:$0xff] %vm121_vm0, %v1909_v53 }
 0x440   :  { %1926 = vst.msk [vmem:[#allocation2 + $0x38] sm:$0xff] %vm121_vm0, %v1910_v55  ;;  %1927 = vst.msk [vmem:[#allocation2 + $0x40] sm:$0xff] %vm121_vm0, %v1911_v60 }
 0x441   :  { %1928 = vst.msk [vmem:[#allocation2 + $0x48] sm:$0xff] %vm121_vm0, %v1912_v49  ;;  %1929 = vst.msk [vmem:[#allocation2 + $0x50] sm:$0xff] %vm121_vm0, %v1913_v38 }
 0x442   :  { %1930 = vst.msk [vmem:[#allocation2 + $0x58] sm:$0xff] %vm121_vm0, %v1914_v8  ;;  %1931 = vst.msk [vmem:[#allocation2 + $0x60] sm:$0xff] %vm121_vm0, %v1915_v57 }
 0x443   :  { %1933 = vst.msk [vmem:[#allocation2 + $0x70] sm:$0xff] %vm121_vm0, %v1917_v42  ;;  %1934 = vst.msk [vmem:[#allocation2 + $0x78] sm:$0xff] %vm121_vm0, %v1918_v11 }
 0x444   :  { %2273 = shalt.err (!%p2270_p4)
}
 0x445   :  { %s2289_s4 = smov 128  }
 0x446   :  { %1946 = dma.vmem_to_hbm [thread:$0]  %s1941_s9, 2048, %s3299_s14, [#allocation3], %s2289_s4, %s2289_s4, %s2286_s10  }
 0x447   :  { %2282 = dma.done.wait [#allocation3], 2048  }
 0x448   :  { %2283 = vsyncadd [#allocation3], 4294965248 }
 0x449   :  { %1950 = vsyncpa [#allocation3], 1 }

</bundles_post_ra>
